<compile_context>
chip_gen: v5e
topology: v5e:2x2
jax: 0.10.0
libtpu: 0.0.40
codegen_flags: <defaults>
</compile_context>

<pallas_src>
import functools

import jax
import jax.numpy as jnp
import numpy as np
from jax.experimental import pallas as pl
from jax.experimental.pallas import tpu as pltpu

LANE = 128  # TPU lane width; lm_head / qkv N dims are padded to a multiple of this.


def _layernorm(x, g, b, eps=1e-5):
    mu = jnp.mean(x, axis=-1, keepdims=True)
    var = jnp.mean((x - mu) ** 2, axis=-1, keepdims=True)
    return (x - mu) * jax.lax.rsqrt(var + eps) * g + b


def _model_kernel(n_layer, n_heads, head_size, Bb, T, vocab, precise, unroll,
                  idx_ref, tok_ref, pos_ref, mask_ref,
                  ln1g_ref, ln1b_ref, wqkv_ref, wo_ref, bo_ref,
                  ln2g_ref, ln2b_ref, w1_ref, b1_ref, w2_ref, b2_ref,
                  lmw_ref, lmb_ref,
                  out_ref):
    R = Bb * T                         # rows (tokens) in this grid block
    H = n_heads * head_size            # == n_embed
    G = n_heads * Bb                   # attention groups (head, sequence) per block
    f32 = jnp.float32
    cdt = jnp.float32 if precise else jnp.bfloat16   # MXU operand dtype

    # ---- fused embedding: exact one-hot gather (f32) + positional add --------------
    idx_col = idx_ref[...]                                            # (R, 1) int32
    col = jax.lax.broadcasted_iota(jnp.int32, (R, vocab), 1)
    onehot = jnp.where(col == idx_col, 1.0, 0.0).astype(f32)          # (R, vocab)
    x = jnp.dot(onehot, tok_ref[...], preferred_element_type=f32)     # (R, E)
    pos = pos_ref[...]                                                # (T, E)
    if Bb == 1:
        x = x + pos
    else:
        x = x + jnp.concatenate([pos] * Bb, axis=0)

    mask = mask_ref[...]               # (T, T) additive causal bias (0 / -1e30), wrapper-built

    def split_heads(t2d):
        # (R, H) f32, cols ordered (head, d) -> (G, T, hs) cdt, groups ordered (head, seq).
        # Relayout + reshape happen in f32 (sublane-tile-aligned); single cast at the end.
        t = jnp.concatenate(
            [t2d[:, h * head_size:(h + 1) * head_size] for h in range(n_heads)], axis=0)
        return t.reshape(G, T, head_size).astype(cdt)

    def merge_heads(t3d):
        # (G, T, hs) f32 -> (R, H) f32, cols ordered (head, d).
        t = t3d.reshape(G * T, head_size)
        return jnp.concatenate(
            [t[h * R:(h + 1) * R, :] for h in range(n_heads)], axis=1)

    def layer_body(l, x):
        # ---- multi-head causal self-attention (pre-LN) ----
        h = _layernorm(x, ln1g_ref[l], ln1b_ref[l])
        qkv = jnp.dot(h.astype(cdt), wqkv_ref[l], preferred_element_type=f32)  # (R, >=3H)
        q = split_heads(qkv[:, 0:H])             # softmax scale pre-folded into wq
        k = split_heads(qkv[:, H:2 * H])
        v = split_heads(qkv[:, 2 * H:3 * H])
        # per-(head, sequence) scores: (G, T, hs) x (G, T, hs) -> (G, T, T)
        s = jax.lax.dot_general(q, k, (((2,), (2,)), ((0,), (0,))),
                                preferred_element_type=f32)
        s = s + mask                             # (T, T) broadcast over G
        s = s - jnp.max(s, axis=-1, keepdims=True)
        e = jnp.exp(s)
        denom = jnp.sum(e, axis=-1, keepdims=True)
        p = (e / denom) if precise else e * pl.reciprocal(denom, approx=True)
        ctx = jax.lax.dot_general(p.astype(cdt), v, (((2,), (1,)), ((0,), (0,))),
                                  preferred_element_type=f32)         # (G, T, hs)
        sa = jnp.dot(merge_heads(ctx).astype(cdt), wo_ref[l],
                     preferred_element_type=f32) + bo_ref[l]
        x = x + sa

        # ---- feed-forward (pre-LN) ----
        h = _layernorm(x, ln2g_ref[l], ln2b_ref[l])
        ff = jnp.dot(h.astype(cdt), w1_ref[l], preferred_element_type=f32) + b1_ref[l]
        ff = jnp.maximum(ff, 0.0)
        ff = jnp.dot(ff.astype(cdt), w2_ref[l], preferred_element_type=f32) + b2_ref[l]
        return x + ff

    if unroll:
        for l in range(n_layer):                 # static indices into the weight stacks
            x = layer_body(l, x)
    else:
        x = jax.lax.fori_loop(0, n_layer, layer_body, x)

    # NOTE: the PyTorch forward never applies ln_f, so neither do we.
    logits = (jnp.dot(x.astype(cdt), lmw_ref[...], preferred_element_type=f32)
              + lmb_ref[...])
    out_ref[...] = logits                        # lane-dense (R, vpad) slab


def _pack_kernel_params(params, *, n_heads, head_size, vocab_pad, weight_dtype):
    """Fuse / reorder / pad / cast the raw parameter dict for the kernel."""
    n_layer, _, n_embed, _ = params["wq"].shape
    H = n_heads * head_size
    scale = head_size ** -0.5
    f32 = jnp.float32

    def flat_heads(w):   # (L, nh, E, hs) -> (L, E, nh*hs), columns ordered (head, d)
        return jnp.transpose(w, (0, 2, 1, 3)).reshape(n_layer, n_embed, H)

    wqkv = jnp.concatenate([flat_heads(params["wq"]) * scale,   # fold softmax scale
                            flat_heads(params["wk"]),
                            flat_heads(params["wv"])], axis=-1)
    qkv_pad = pl.cdiv(3 * H, LANE) * LANE        # lane-align the QKV N dim (v5e-friendly)
    if qkv_pad > 3 * H:
        wqkv = jnp.pad(wqkv, ((0, 0), (0, 0), (0, qkv_pad - 3 * H)))
    wqkv = wqkv.astype(weight_dtype)

    wo = params["wo"].reshape(n_layer, H, n_embed).astype(weight_dtype)
    vocab = params["lmw"].shape[-1]
    pad = vocab_pad - vocab
    lmw = jnp.pad(params["lmw"], ((0, 0), (0, pad))).astype(weight_dtype)
    lmb = jnp.pad(params["lmb"], ((0, 0), (0, pad))).astype(f32)
    return [params["ln1g"].astype(f32), params["ln1b"].astype(f32), wqkv, wo,
            params["bo"].astype(f32), params["ln2g"].astype(f32),
            params["ln2b"].astype(f32),
            params["w1"].astype(weight_dtype), params["b1"].astype(f32),
            params["w2"].astype(weight_dtype), params["b2"].astype(f32),
            lmw, lmb]


def transformer_logits_pallas(params, idx, *, n_layer, n_heads, head_size, vocab_size,
                              precise=False):
    B, T = idx.shape
    E = params["tok_emb"].shape[1]
    H = n_heads * head_size
    vpad = pl.cdiv(vocab_size, LANE) * LANE

    # Row-block grid: each step processes whole sequences (attention mixes within a
    # sequence).  >= 2 blocks + "parallel" lets v7x shard across its two TensorCores;
    # on v5e/v6e the blocks pipeline input/compute/writeback.
    nblk = 2 if (B % 2 == 0 and B >= 2) else 1
    Bb = B // nblk
    R = Bb * T

    weight_dtype = jnp.float32 if precise else jnp.bfloat16
    wlist = _pack_kernel_params(params, n_heads=n_heads, head_size=head_size,
                                vocab_pad=vpad, weight_dtype=weight_dtype)
    idx2d = idx.reshape(B * T, 1).astype(jnp.int32)
    tok_tab = params["tok_emb"].astype(jnp.float32)
    pos = params["pos_emb"][:T].astype(jnp.float32)
    # Additive causal mask precomputed on the host (no in-kernel iota/div/mod work).
    mask = jnp.asarray(np.where(np.tril(np.ones((T, T), np.bool_)), 0.0, -1e30),
                       dtype=jnp.float32)

    inputs = [idx2d, tok_tab, pos, mask] + wlist

    def resident(a):     # full-array block, constant index map -> stays VMEM-resident
        nd = a.ndim
        return pl.BlockSpec(a.shape, lambda i, _nd=nd: (0,) * _nd)

    in_specs = ([pl.BlockSpec((R, 1), lambda i: (i, 0))]        # idx rows per block
                + [resident(a) for a in inputs[1:]])
    out_specs = pl.BlockSpec((R, vpad), lambda i: (i, 0))

    # Explicit VMEM limit + advisory cost estimate (perf feedback).
    in_bytes = sum(int(a.size) * a.dtype.itemsize for a in inputs)
    out_bytes = B * T * vpad * 4
    act_bytes = R * max(4 * E, 4 * H, vpad) * 4 * 16            # rough live-activation bound
    vmem_limit = int(min(max(2 * (in_bytes + out_bytes + act_bytes), 16 << 20), 64 << 20))
    flops = (2 * B * T * n_layer * (E * 3 * H + H * E + 8 * E * E)
             + 4 * B * n_layer * n_heads * T * T * head_size
             + 2 * B * T * (vocab_size * E + E * vpad))
    cost = pl.CostEstimate(flops=int(flops),
                           transcendentals=int(B * n_layer * n_heads * T * T),
                           bytes_accessed=int(in_bytes + out_bytes))

    kernel = functools.partial(_model_kernel, n_layer, n_heads, head_size, Bb, T,
                               vocab_size, precise, n_layer <= 8)
    out = pl.pallas_call(
        kernel,
        out_shape=jax.ShapeDtypeStruct((B * T, vpad), jnp.float32),
        grid=(nblk,),
        in_specs=in_specs,
        out_specs=out_specs,
        compiler_params=pltpu.CompilerParams(
            dimension_semantics=("parallel",),
            vmem_limit_bytes=vmem_limit),
        cost_estimate=cost,
    )(*inputs)
    return out[:, :vocab_size].reshape(B, T, vocab_size)


def bigram_forward(params, idx, targets=None, *, n_layer, n_heads, head_size,
                   vocab_size, precise=False):
    B, T = idx.shape
    logits = transformer_logits_pallas(params, idx, n_layer=n_layer, n_heads=n_heads,
                                       head_size=head_size, vocab_size=vocab_size,
                                       precise=precise)
    if targets is None:
        return logits, None
    lf = logits.reshape(B * T, vocab_size)
    tf = targets.reshape(B * T)
    logp = jax.nn.log_softmax(lf, axis=-1)                  # cross-entropy glue (outside kernel)
    loss = -jnp.mean(jnp.take_along_axis(logp, tf[:, None], axis=1))
    return logits, loss


def reference_forward(params, idx, *, n_layer, n_heads, head_size, vocab_size):
    """Pure-JAX f32 reference mirroring the PyTorch forward, for correctness check."""
    B, T = idx.shape
    x = params["tok_emb"][idx] + params["pos_emb"][:T][None]
    scale = head_size ** -0.5
    causal = jnp.tril(jnp.ones((T, T), bool))
    for l in range(n_layer):
        h = _layernorm(x, params["ln1g"][l], params["ln1b"][l])
        sa = jnp.zeros_like(x)
        for hd in range(n_heads):
            q = h @ params["wq"][l, hd]
            k = h @ params["wk"][l, hd]
            v = h @ params["wv"][l, hd]
            wei = jnp.einsum("btd,bsd->bts", q, k) * scale
            wei = jnp.where(causal[None], wei, -jnp.inf)
            wei = jax.nn.softmax(wei, axis=-1)
            sa = sa + jnp.einsum("bts,bsd->btd", wei, v) @ params["wo"][l, hd]
        x = x + sa + params["bo"][l]
        h = _layernorm(x, params["ln2g"][l], params["ln2b"][l])
        ff = jax.nn.relu(h @ params["w1"][l] + params["b1"][l]) @ params["w2"][l] + params["b2"][l]
        x = x + ff
    return x @ params["lmw"] + params["lmb"][0]


def init_params(key, vocab_size, n_embed, block_size, n_layer, n_heads, head_size):
    ks = jax.random.split(key, 13)
    rnd = lambda k, s: (0.02 * jax.random.normal(k, s)).astype(jnp.float32)
    return {
        "tok_emb": rnd(ks[0], (vocab_size, n_embed)),
        "pos_emb": rnd(ks[1], (block_size, n_embed)),
        "ln1g": jnp.ones((n_layer, 1, n_embed), jnp.float32),
        "ln1b": jnp.zeros((n_layer, 1, n_embed), jnp.float32),
        "wq": rnd(ks[2], (n_layer, n_heads, n_embed, head_size)),
        "wk": rnd(ks[3], (n_layer, n_heads, n_embed, head_size)),
        "wv": rnd(ks[4], (n_layer, n_heads, n_embed, head_size)),
        "wo": rnd(ks[5], (n_layer, n_heads, head_size, n_embed)),
        "bo": rnd(ks[6], (n_layer, 1, n_embed)),
        "ln2g": jnp.ones((n_layer, 1, n_embed), jnp.float32),
        "ln2b": jnp.zeros((n_layer, 1, n_embed), jnp.float32),
        "w1": rnd(ks[7], (n_layer, n_embed, 4 * n_embed)),
        "b1": rnd(ks[8], (n_layer, 1, 4 * n_embed)),
        "w2": rnd(ks[9], (n_layer, 4 * n_embed, n_embed)),
        "b2": rnd(ks[10], (n_layer, 1, n_embed)),
        "lmw": rnd(ks[11], (n_embed, vocab_size)),
        "lmb": rnd(ks[12], (1, vocab_size)),
    }


if __name__ == "__main__":
    vocab_size, n_embed, block_size, n_layer, n_heads = 64, 32, 8, 2, 4
    head_size = n_embed // n_heads
    B, T = 2, block_size

    key = jax.random.PRNGKey(0)
    kp, ki = jax.random.split(key)
    params = init_params(kp, vocab_size, n_embed, block_size, n_layer, n_heads, head_size)
    idx = jax.random.randint(ki, (B, T), 0, vocab_size, dtype=jnp.int32)

    # Fast path (bf16 MXU operands, approx reciprocal).
    logits, loss = bigram_forward(params, idx, targets=None,
                                  n_layer=n_layer, n_heads=n_heads,
                                  head_size=head_size, vocab_size=vocab_size)
    logits = jax.block_until_ready(logits)
    assert logits.shape == (B, T, vocab_size) and loss is None

    # Loss path (cross-entropy glue outside the kernel).
    _, loss2 = bigram_forward(params, idx, targets=idx,
                              n_layer=n_layer, n_heads=n_heads,
                              head_size=head_size, vocab_size=vocab_size)
    loss2 = jax.block_until_ready(loss2)
    assert np.isfinite(float(loss2))

    # High-precision pure-JAX reference (true-f32 matmuls).
    with jax.default_matmul_precision("highest"):
        ref = reference_forward(params, idx, n_layer=n_layer, n_heads=n_heads,
                                head_size=head_size, vocab_size=vocab_size)
        ref = jax.block_until_ready(ref)

    # Fast path: loose tolerance (bf16 MXU + approx reciprocal).
    np.testing.assert_allclose(np.asarray(logits), np.asarray(ref), rtol=5e-2, atol=5e-3)

    # Precise debug path (f32 weights/matmuls, exact reciprocal): tight tolerance,
    # guards against head-ordering / packing bugs that the loose tolerance could hide.
    logits_precise, _ = bigram_forward(params, idx, targets=None,
                                       n_layer=n_layer, n_heads=n_heads,
                                       head_size=head_size, vocab_size=vocab_size,
                                       precise=True)
    logits_precise = jax.block_until_ready(logits_precise)
    assert logits_precise.shape == (B, T, vocab_size)
    np.testing.assert_allclose(np.asarray(logits_precise), np.asarray(ref),
                               rtol=2e-3, atol=1e-4)

    print("KERNEL_OK")
</pallas_src>

<mosaic_0001>
module attributes {stable_mosaic.version = 11 : i64} {
  func.func @_model_kernel(%arg0: i32, %arg1: memref<8x1xi32, #tpu.memory_space<vmem>>, %arg2: memref<64x32xf32, #tpu.memory_space<vmem>>, %arg3: memref<8x32xf32, #tpu.memory_space<vmem>>, %arg4: memref<8x8xf32, #tpu.memory_space<vmem>>, %arg5: memref<2x1x32xf32, #tpu.memory_space<vmem>>, %arg6: memref<2x1x32xf32, #tpu.memory_space<vmem>>, %arg7: memref<2x32x128xbf16, #tpu.memory_space<vmem>>, %arg8: memref<2x32x32xbf16, #tpu.memory_space<vmem>>, %arg9: memref<2x1x32xf32, #tpu.memory_space<vmem>>, %arg10: memref<2x1x32xf32, #tpu.memory_space<vmem>>, %arg11: memref<2x1x32xf32, #tpu.memory_space<vmem>>, %arg12: memref<2x32x128xbf16, #tpu.memory_space<vmem>>, %arg13: memref<2x1x128xf32, #tpu.memory_space<vmem>>, %arg14: memref<2x128x32xbf16, #tpu.memory_space<vmem>>, %arg15: memref<2x1x32xf32, #tpu.memory_space<vmem>>, %arg16: memref<32x128xbf16, #tpu.memory_space<vmem>>, %arg17: memref<1x128xf32, #tpu.memory_space<vmem>>, %arg18: memref<8x128xf32, #tpu.memory_space<vmem>>) attributes {dimension_semantics = [#tpu.dimension_semantics<parallel>], iteration_bounds = array<i64: 2>, scalar_prefetch = 0 : i64, scratch_operands = 0 : i64, tpu.core_type = #tpu.core_type<tc>, window_params = [{transform_indices = @transform_0, window_bounds = array<i64: 8, 1>}, {pipeline_mode = #tpu.pipeline_mode<synchronous>, transform_indices = @transform_1, window_bounds = array<i64: 64, 32>}, {pipeline_mode = #tpu.pipeline_mode<synchronous>, transform_indices = @transform_2, window_bounds = array<i64: 8, 32>}, {pipeline_mode = #tpu.pipeline_mode<synchronous>, transform_indices = @transform_3, window_bounds = array<i64: 8, 8>}, {pipeline_mode = #tpu.pipeline_mode<synchronous>, transform_indices = @transform_4, window_bounds = array<i64: 2, 1, 32>}, {pipeline_mode = #tpu.pipeline_mode<synchronous>, transform_indices = @transform_5, window_bounds = array<i64: 2, 1, 32>}, {pipeline_mode = #tpu.pipeline_mode<synchronous>, transform_indices = @transform_6, window_bounds = array<i64: 2, 32, 128>}, {pipeline_mode = #tpu.pipeline_mode<synchronous>, transform_indices = @transform_7, window_bounds = array<i64: 2, 32, 32>}, {pipeline_mode = #tpu.pipeline_mode<synchronous>, transform_indices = @transform_8, window_bounds = array<i64: 2, 1, 32>}, {pipeline_mode = #tpu.pipeline_mode<synchronous>, transform_indices = @transform_9, window_bounds = array<i64: 2, 1, 32>}, {pipeline_mode = #tpu.pipeline_mode<synchronous>, transform_indices = @transform_10, window_bounds = array<i64: 2, 1, 32>}, {pipeline_mode = #tpu.pipeline_mode<synchronous>, transform_indices = @transform_11, window_bounds = array<i64: 2, 32, 128>}, {pipeline_mode = #tpu.pipeline_mode<synchronous>, transform_indices = @transform_12, window_bounds = array<i64: 2, 1, 128>}, {pipeline_mode = #tpu.pipeline_mode<synchronous>, transform_indices = @transform_13, window_bounds = array<i64: 2, 128, 32>}, {pipeline_mode = #tpu.pipeline_mode<synchronous>, transform_indices = @transform_14, window_bounds = array<i64: 2, 1, 32>}, {pipeline_mode = #tpu.pipeline_mode<synchronous>, transform_indices = @transform_15, window_bounds = array<i64: 32, 128>}, {pipeline_mode = #tpu.pipeline_mode<synchronous>, transform_indices = @transform_16, window_bounds = array<i64: 1, 128>}, {transform_indices = @transform_17, window_bounds = array<i64: 8, 128>}]} {
    %c0 = arith.constant 0 : index
    %c0_0 = arith.constant 0 : index
    %0 = vector.load %arg1[%c0, %c0_0] : memref<8x1xi32, #tpu.memory_space<vmem>>, vector<8x1xi32>
    %1 = tpu.iota {dimensions = array<i32: 1>} : vector<8x64xi32>
    %2 = vector.broadcast %0 : vector<8x1xi32> to vector<8x64xi32>
    %3 = arith.cmpi eq, %1, %2 : vector<8x64xi32>
    %cst = arith.constant 1.000000e+00 : f32
    %cst_1 = arith.constant 0.000000e+00 : f32
    %4 = vector.broadcast %cst : f32 to vector<8x64xf32>
    %5 = vector.broadcast %cst_1 : f32 to vector<8x64xf32>
    %6 = arith.select %3, %4, %5 : vector<8x64xi1>, vector<8x64xf32>
    %c0_2 = arith.constant 0 : index
    %c0_3 = arith.constant 0 : index
    %7 = vector.load %arg2[%c0_2, %c0_3] : memref<64x32xf32, #tpu.memory_space<vmem>>, vector<64x32xf32>
    %cst_4 = arith.constant dense<0.000000e+00> : vector<8x32xf32>
    %8 = tpu.matmul %6, %7, %cst_4 {dimension_numbers = #tpu.dot_dimension_numbers<[1], [0], [0], [1], [0, 0, 1, 1], [], []>} : vector<8x64xf32>, vector<64x32xf32>, vector<8x32xf32> -> vector<8x32xf32>
    %c0_5 = arith.constant 0 : index
    %c0_6 = arith.constant 0 : index
    %9 = vector.load %arg3[%c0_5, %c0_6] : memref<8x32xf32, #tpu.memory_space<vmem>>, vector<8x32xf32>
    %10 = arith.addf %8, %9 : vector<8x32xf32>
    %c0_7 = arith.constant 0 : index
    %c0_8 = arith.constant 0 : index
    %11 = vector.load %arg4[%c0_7, %c0_8] : memref<8x8xf32, #tpu.memory_space<vmem>>, vector<8x8xf32>
    %c0_9 = arith.constant 0 : index
    %c0_10 = arith.constant 0 : index
    %c0_11 = arith.constant 0 : index
    %12 = vector.load %arg5[%c0_9, %c0_10, %c0_11] : memref<2x1x32xf32, #tpu.memory_space<vmem>>, vector<1x1x32xf32>
    %13 = vector.shape_cast %12 : vector<1x1x32xf32> to vector<1x32xf32>
    %c0_12 = arith.constant 0 : index
    %c0_13 = arith.constant 0 : index
    %c0_14 = arith.constant 0 : index
    %14 = vector.load %arg6[%c0_12, %c0_13, %c0_14] : memref<2x1x32xf32, #tpu.memory_space<vmem>>, vector<1x1x32xf32>
    %15 = vector.shape_cast %14 : vector<1x1x32xf32> to vector<1x32xf32>
    %cst_15 = arith.constant dense<0.000000e+00> : vector<8xf32>
    %16 = vector.multi_reduction <add>, %10, %cst_15 [1] : vector<8x32xf32> to vector<8xf32>
    %17 = vector.shape_cast %16 : vector<8xf32> to vector<8x1xf32>
    %cst_16 = arith.constant 3.200000e+01 : f32
    %18 = vector.broadcast %cst_16 : f32 to vector<8x1xf32>
    %19 = arith.divf %17, %18 : vector<8x1xf32>
    %20 = vector.broadcast %19 : vector<8x1xf32> to vector<8x32xf32>
    %21 = arith.subf %10, %20 : vector<8x32xf32>
    %22 = arith.mulf %21, %21 : vector<8x32xf32>
    %cst_17 = arith.constant dense<0.000000e+00> : vector<8xf32>
    %23 = vector.multi_reduction <add>, %22, %cst_17 [1] : vector<8x32xf32> to vector<8xf32>
    %24 = vector.shape_cast %23 : vector<8xf32> to vector<8x1xf32>
    %cst_18 = arith.constant 3.200000e+01 : f32
    %25 = vector.broadcast %cst_18 : f32 to vector<8x1xf32>
    %26 = arith.divf %24, %25 : vector<8x1xf32>
    %27 = vector.broadcast %19 : vector<8x1xf32> to vector<8x32xf32>
    %28 = arith.subf %10, %27 : vector<8x32xf32>
    %cst_19 = arith.constant 9.99999974E-6 : f32
    %29 = vector.broadcast %cst_19 : f32 to vector<8x1xf32>
    %30 = arith.addf %26, %29 : vector<8x1xf32>
    %31 = math.rsqrt %30 : vector<8x1xf32>
    %32 = vector.broadcast %31 : vector<8x1xf32> to vector<8x32xf32>
    %33 = arith.mulf %28, %32 : vector<8x32xf32>
    %34 = vector.broadcast %13 : vector<1x32xf32> to vector<8x32xf32>
    %35 = arith.mulf %33, %34 : vector<8x32xf32>
    %36 = vector.broadcast %15 : vector<1x32xf32> to vector<8x32xf32>
    %37 = arith.addf %35, %36 : vector<8x32xf32>
    %38 = arith.truncf %37 : vector<8x32xf32> to vector<8x32xbf16>
    %c0_20 = arith.constant 0 : index
    %c0_21 = arith.constant 0 : index
    %c0_22 = arith.constant 0 : index
    %39 = vector.load %arg7[%c0_20, %c0_21, %c0_22] : memref<2x32x128xbf16, #tpu.memory_space<vmem>>, vector<1x32x128xbf16>
    %40 = vector.shape_cast %39 : vector<1x32x128xbf16> to vector<32x128xbf16>
    %cst_23 = arith.constant dense<0.000000e+00> : vector<8x128xf32>
    %41 = tpu.matmul %38, %40, %cst_23 {dimension_numbers = #tpu.dot_dimension_numbers<[1], [0], [0], [1], [0, 0, 1, 1], [], []>} : vector<8x32xbf16>, vector<32x128xbf16>, vector<8x128xf32> -> vector<8x128xf32>
    %42 = vector.extract_strided_slice %41 {offsets = [0, 0], sizes = [8, 32], strides = [1, 1]} : vector<8x128xf32> to vector<8x32xf32>
    %43 = vector.extract_strided_slice %42 {offsets = [0, 0], sizes = [8, 8], strides = [1, 1]} : vector<8x32xf32> to vector<8x8xf32>
    %44 = vector.extract_strided_slice %42 {offsets = [0, 8], sizes = [8, 8], strides = [1, 1]} : vector<8x32xf32> to vector<8x8xf32>
    %45 = vector.extract_strided_slice %42 {offsets = [0, 16], sizes = [8, 8], strides = [1, 1]} : vector<8x32xf32> to vector<8x8xf32>
    %46 = vector.extract_strided_slice %42 {offsets = [0, 24], sizes = [8, 8], strides = [1, 1]} : vector<8x32xf32> to vector<8x8xf32>
    %47 = tpu.concatenate %43, %44, %45, %46 in 0 : vector<8x8xf32>, vector<8x8xf32>, vector<8x8xf32>, vector<8x8xf32> -> vector<32x8xf32>
    %48 = vector.shape_cast %47 : vector<32x8xf32> to vector<4x8x8xf32>
    %49 = arith.truncf %48 : vector<4x8x8xf32> to vector<4x8x8xbf16>
    %50 = vector.extract_strided_slice %41 {offsets = [0, 32], sizes = [8, 32], strides = [1, 1]} : vector<8x128xf32> to vector<8x32xf32>
    %51 = vector.extract_strided_slice %50 {offsets = [0, 0], sizes = [8, 8], strides = [1, 1]} : vector<8x32xf32> to vector<8x8xf32>
    %52 = vector.extract_strided_slice %50 {offsets = [0, 8], sizes = [8, 8], strides = [1, 1]} : vector<8x32xf32> to vector<8x8xf32>
    %53 = vector.extract_strided_slice %50 {offsets = [0, 16], sizes = [8, 8], strides = [1, 1]} : vector<8x32xf32> to vector<8x8xf32>
    %54 = vector.extract_strided_slice %50 {offsets = [0, 24], sizes = [8, 8], strides = [1, 1]} : vector<8x32xf32> to vector<8x8xf32>
    %55 = tpu.concatenate %51, %52, %53, %54 in 0 : vector<8x8xf32>, vector<8x8xf32>, vector<8x8xf32>, vector<8x8xf32> -> vector<32x8xf32>
    %56 = vector.shape_cast %55 : vector<32x8xf32> to vector<4x8x8xf32>
    %57 = arith.truncf %56 : vector<4x8x8xf32> to vector<4x8x8xbf16>
    %58 = vector.extract_strided_slice %41 {offsets = [0, 64], sizes = [8, 32], strides = [1, 1]} : vector<8x128xf32> to vector<8x32xf32>
    %59 = vector.extract_strided_slice %58 {offsets = [0, 0], sizes = [8, 8], strides = [1, 1]} : vector<8x32xf32> to vector<8x8xf32>
    %60 = vector.extract_strided_slice %58 {offsets = [0, 8], sizes = [8, 8], strides = [1, 1]} : vector<8x32xf32> to vector<8x8xf32>
    %61 = vector.extract_strided_slice %58 {offsets = [0, 16], sizes = [8, 8], strides = [1, 1]} : vector<8x32xf32> to vector<8x8xf32>
    %62 = vector.extract_strided_slice %58 {offsets = [0, 24], sizes = [8, 8], strides = [1, 1]} : vector<8x32xf32> to vector<8x8xf32>
    %63 = tpu.concatenate %59, %60, %61, %62 in 0 : vector<8x8xf32>, vector<8x8xf32>, vector<8x8xf32>, vector<8x8xf32> -> vector<32x8xf32>
    %64 = vector.shape_cast %63 : vector<32x8xf32> to vector<4x8x8xf32>
    %65 = arith.truncf %64 : vector<4x8x8xf32> to vector<4x8x8xbf16>
    %cst_24 = arith.constant dense<0.000000e+00> : vector<4x8x8xf32>
    %66 = tpu.matmul %49, %57, %cst_24 {dimension_numbers = #tpu.dot_dimension_numbers<[2], [2], [1], [1], [0, 0, 0, 1, 1, 1], [0], [0]>} : vector<4x8x8xbf16>, vector<4x8x8xbf16>, vector<4x8x8xf32> -> vector<4x8x8xf32>
    %67 = vector.shape_cast %11 : vector<8x8xf32> to vector<1x8x8xf32>
    %68 = vector.broadcast %67 : vector<1x8x8xf32> to vector<4x8x8xf32>
    %69 = arith.addf %66, %68 : vector<4x8x8xf32>
    %cst_25 = arith.constant dense<0xFF800000> : vector<4x8xf32>
    %70 = vector.multi_reduction <maximumf>, %69, %cst_25 [2] : vector<4x8x8xf32> to vector<4x8xf32>
    %71 = vector.shape_cast %70 : vector<4x8xf32> to vector<4x8x1xf32>
    %72 = vector.broadcast %71 : vector<4x8x1xf32> to vector<4x8x8xf32>
    %73 = arith.subf %69, %72 : vector<4x8x8xf32>
    %74 = math.exp %73 : vector<4x8x8xf32>
    %cst_26 = arith.constant dense<0.000000e+00> : vector<4x8xf32>
    %75 = vector.multi_reduction <add>, %74, %cst_26 [2] : vector<4x8x8xf32> to vector<4x8xf32>
    %76 = vector.shape_cast %75 : vector<4x8xf32> to vector<4x8x1xf32>
    %77 = tpu.reciprocal %76 {approx = true} : vector<4x8x1xf32> -> vector<4x8x1xf32>
    %78 = vector.broadcast %77 : vector<4x8x1xf32> to vector<4x8x8xf32>
    %79 = arith.mulf %74, %78 : vector<4x8x8xf32>
    %80 = arith.truncf %79 : vector<4x8x8xf32> to vector<4x8x8xbf16>
    %cst_27 = arith.constant dense<0.000000e+00> : vector<4x8x8xf32>
    %81 = tpu.matmul %80, %65, %cst_27 {dimension_numbers = #tpu.dot_dimension_numbers<[2], [1], [1], [2], [0, 0, 0, 1, 1, 2], [0], [0]>} : vector<4x8x8xbf16>, vector<4x8x8xbf16>, vector<4x8x8xf32> -> vector<4x8x8xf32>
    %82 = vector.shape_cast %81 : vector<4x8x8xf32> to vector<32x8xf32>
    %83 = vector.extract_strided_slice %82 {offsets = [0, 0], sizes = [8, 8], strides = [1, 1]} : vector<32x8xf32> to vector<8x8xf32>
    %84 = vector.extract_strided_slice %82 {offsets = [8, 0], sizes = [8, 8], strides = [1, 1]} : vector<32x8xf32> to vector<8x8xf32>
    %85 = vector.extract_strided_slice %82 {offsets = [16, 0], sizes = [8, 8], strides = [1, 1]} : vector<32x8xf32> to vector<8x8xf32>
    %86 = vector.extract_strided_slice %82 {offsets = [24, 0], sizes = [8, 8], strides = [1, 1]} : vector<32x8xf32> to vector<8x8xf32>
    %87 = tpu.concatenate %83, %84, %85, %86 in 1 : vector<8x8xf32>, vector<8x8xf32>, vector<8x8xf32>, vector<8x8xf32> -> vector<8x32xf32>
    %88 = arith.truncf %87 : vector<8x32xf32> to vector<8x32xbf16>
    %c0_28 = arith.constant 0 : index
    %c0_29 = arith.constant 0 : index
    %c0_30 = arith.constant 0 : index
    %89 = vector.load %arg8[%c0_28, %c0_29, %c0_30] : memref<2x32x32xbf16, #tpu.memory_space<vmem>>, vector<1x32x32xbf16>
    %90 = vector.shape_cast %89 : vector<1x32x32xbf16> to vector<32x32xbf16>
    %cst_31 = arith.constant dense<0.000000e+00> : vector<8x32xf32>
    %91 = tpu.matmul %88, %90, %cst_31 {dimension_numbers = #tpu.dot_dimension_numbers<[1], [0], [0], [1], [0, 0, 1, 1], [], []>} : vector<8x32xbf16>, vector<32x32xbf16>, vector<8x32xf32> -> vector<8x32xf32>
    %c0_32 = arith.constant 0 : index
    %c0_33 = arith.constant 0 : index
    %c0_34 = arith.constant 0 : index
    %92 = vector.load %arg9[%c0_32, %c0_33, %c0_34] : memref<2x1x32xf32, #tpu.memory_space<vmem>>, vector<1x1x32xf32>
    %93 = vector.shape_cast %92 : vector<1x1x32xf32> to vector<1x32xf32>
    %94 = vector.broadcast %93 : vector<1x32xf32> to vector<8x32xf32>
    %95 = arith.addf %91, %94 : vector<8x32xf32>
    %96 = arith.addf %10, %95 : vector<8x32xf32>
    %c0_35 = arith.constant 0 : index
    %c0_36 = arith.constant 0 : index
    %c0_37 = arith.constant 0 : index
    %97 = vector.load %arg10[%c0_35, %c0_36, %c0_37] : memref<2x1x32xf32, #tpu.memory_space<vmem>>, vector<1x1x32xf32>
    %98 = vector.shape_cast %97 : vector<1x1x32xf32> to vector<1x32xf32>
    %c0_38 = arith.constant 0 : index
    %c0_39 = arith.constant 0 : index
    %c0_40 = arith.constant 0 : index
    %99 = vector.load %arg11[%c0_38, %c0_39, %c0_40] : memref<2x1x32xf32, #tpu.memory_space<vmem>>, vector<1x1x32xf32>
    %100 = vector.shape_cast %99 : vector<1x1x32xf32> to vector<1x32xf32>
    %cst_41 = arith.constant dense<0.000000e+00> : vector<8xf32>
    %101 = vector.multi_reduction <add>, %96, %cst_41 [1] : vector<8x32xf32> to vector<8xf32>
    %102 = vector.shape_cast %101 : vector<8xf32> to vector<8x1xf32>
    %cst_42 = arith.constant 3.200000e+01 : f32
    %103 = vector.broadcast %cst_42 : f32 to vector<8x1xf32>
    %104 = arith.divf %102, %103 : vector<8x1xf32>
    %105 = vector.broadcast %104 : vector<8x1xf32> to vector<8x32xf32>
    %106 = arith.subf %96, %105 : vector<8x32xf32>
    %107 = arith.mulf %106, %106 : vector<8x32xf32>
    %cst_43 = arith.constant dense<0.000000e+00> : vector<8xf32>
    %108 = vector.multi_reduction <add>, %107, %cst_43 [1] : vector<8x32xf32> to vector<8xf32>
    %109 = vector.shape_cast %108 : vector<8xf32> to vector<8x1xf32>
    %cst_44 = arith.constant 3.200000e+01 : f32
    %110 = vector.broadcast %cst_44 : f32 to vector<8x1xf32>
    %111 = arith.divf %109, %110 : vector<8x1xf32>
    %112 = vector.broadcast %104 : vector<8x1xf32> to vector<8x32xf32>
    %113 = arith.subf %96, %112 : vector<8x32xf32>
    %cst_45 = arith.constant 9.99999974E-6 : f32
    %114 = vector.broadcast %cst_45 : f32 to vector<8x1xf32>
    %115 = arith.addf %111, %114 : vector<8x1xf32>
    %116 = math.rsqrt %115 : vector<8x1xf32>
    %117 = vector.broadcast %116 : vector<8x1xf32> to vector<8x32xf32>
    %118 = arith.mulf %113, %117 : vector<8x32xf32>
    %119 = vector.broadcast %98 : vector<1x32xf32> to vector<8x32xf32>
    %120 = arith.mulf %118, %119 : vector<8x32xf32>
    %121 = vector.broadcast %100 : vector<1x32xf32> to vector<8x32xf32>
    %122 = arith.addf %120, %121 : vector<8x32xf32>
    %123 = arith.truncf %122 : vector<8x32xf32> to vector<8x32xbf16>
    %c0_46 = arith.constant 0 : index
    %c0_47 = arith.constant 0 : index
    %c0_48 = arith.constant 0 : index
    %124 = vector.load %arg12[%c0_46, %c0_47, %c0_48] : memref<2x32x128xbf16, #tpu.memory_space<vmem>>, vector<1x32x128xbf16>
    %125 = vector.shape_cast %124 : vector<1x32x128xbf16> to vector<32x128xbf16>
    %cst_49 = arith.constant dense<0.000000e+00> : vector<8x128xf32>
    %126 = tpu.matmul %123, %125, %cst_49 {dimension_numbers = #tpu.dot_dimension_numbers<[1], [0], [0], [1], [0, 0, 1, 1], [], []>} : vector<8x32xbf16>, vector<32x128xbf16>, vector<8x128xf32> -> vector<8x128xf32>
    %c0_50 = arith.constant 0 : index
    %c0_51 = arith.constant 0 : index
    %c0_52 = arith.constant 0 : index
    %127 = vector.load %arg13[%c0_50, %c0_51, %c0_52] : memref<2x1x128xf32, #tpu.memory_space<vmem>>, vector<1x1x128xf32>
    %128 = vector.shape_cast %127 : vector<1x1x128xf32> to vector<1x128xf32>
    %129 = vector.broadcast %128 : vector<1x128xf32> to vector<8x128xf32>
    %130 = arith.addf %126, %129 : vector<8x128xf32>
    %cst_53 = arith.constant 0.000000e+00 : f32
    %131 = vector.broadcast %cst_53 : f32 to vector<8x128xf32>
    %132 = arith.maximumf %130, %131 : vector<8x128xf32>
    %133 = arith.truncf %132 : vector<8x128xf32> to vector<8x128xbf16>
    %c0_54 = arith.constant 0 : index
    %c0_55 = arith.constant 0 : index
    %c0_56 = arith.constant 0 : index
    %134 = vector.load %arg14[%c0_54, %c0_55, %c0_56] : memref<2x128x32xbf16, #tpu.memory_space<vmem>>, vector<1x128x32xbf16>
    %135 = vector.shape_cast %134 : vector<1x128x32xbf16> to vector<128x32xbf16>
    %cst_57 = arith.constant dense<0.000000e+00> : vector<8x32xf32>
    %136 = tpu.matmul %133, %135, %cst_57 {dimension_numbers = #tpu.dot_dimension_numbers<[1], [0], [0], [1], [0, 0, 1, 1], [], []>} : vector<8x128xbf16>, vector<128x32xbf16>, vector<8x32xf32> -> vector<8x32xf32>
    %c0_58 = arith.constant 0 : index
    %c0_59 = arith.constant 0 : index
    %c0_60 = arith.constant 0 : index
    %137 = vector.load %arg15[%c0_58, %c0_59, %c0_60] : memref<2x1x32xf32, #tpu.memory_space<vmem>>, vector<1x1x32xf32>
    %138 = vector.shape_cast %137 : vector<1x1x32xf32> to vector<1x32xf32>
    %139 = vector.broadcast %138 : vector<1x32xf32> to vector<8x32xf32>
    %140 = arith.addf %136, %139 : vector<8x32xf32>
    %141 = arith.addf %96, %140 : vector<8x32xf32>
    %c1 = arith.constant 1 : index
    %c0_61 = arith.constant 0 : index
    %c0_62 = arith.constant 0 : index
    %142 = vector.load %arg5[%c1, %c0_61, %c0_62] : memref<2x1x32xf32, #tpu.memory_space<vmem>>, vector<1x1x32xf32>
    %143 = vector.shape_cast %142 : vector<1x1x32xf32> to vector<1x32xf32>
    %c1_63 = arith.constant 1 : index
    %c0_64 = arith.constant 0 : index
    %c0_65 = arith.constant 0 : index
    %144 = vector.load %arg6[%c1_63, %c0_64, %c0_65] : memref<2x1x32xf32, #tpu.memory_space<vmem>>, vector<1x1x32xf32>
    %145 = vector.shape_cast %144 : vector<1x1x32xf32> to vector<1x32xf32>
    %cst_66 = arith.constant dense<0.000000e+00> : vector<8xf32>
    %146 = vector.multi_reduction <add>, %141, %cst_66 [1] : vector<8x32xf32> to vector<8xf32>
    %147 = vector.shape_cast %146 : vector<8xf32> to vector<8x1xf32>
    %cst_67 = arith.constant 3.200000e+01 : f32
    %148 = vector.broadcast %cst_67 : f32 to vector<8x1xf32>
    %149 = arith.divf %147, %148 : vector<8x1xf32>
    %150 = vector.broadcast %149 : vector<8x1xf32> to vector<8x32xf32>
    %151 = arith.subf %141, %150 : vector<8x32xf32>
    %152 = arith.mulf %151, %151 : vector<8x32xf32>
    %cst_68 = arith.constant dense<0.000000e+00> : vector<8xf32>
    %153 = vector.multi_reduction <add>, %152, %cst_68 [1] : vector<8x32xf32> to vector<8xf32>
    %154 = vector.shape_cast %153 : vector<8xf32> to vector<8x1xf32>
    %cst_69 = arith.constant 3.200000e+01 : f32
    %155 = vector.broadcast %cst_69 : f32 to vector<8x1xf32>
    %156 = arith.divf %154, %155 : vector<8x1xf32>
    %157 = vector.broadcast %149 : vector<8x1xf32> to vector<8x32xf32>
    %158 = arith.subf %141, %157 : vector<8x32xf32>
    %cst_70 = arith.constant 9.99999974E-6 : f32
    %159 = vector.broadcast %cst_70 : f32 to vector<8x1xf32>
    %160 = arith.addf %156, %159 : vector<8x1xf32>
    %161 = math.rsqrt %160 : vector<8x1xf32>
    %162 = vector.broadcast %161 : vector<8x1xf32> to vector<8x32xf32>
    %163 = arith.mulf %158, %162 : vector<8x32xf32>
    %164 = vector.broadcast %143 : vector<1x32xf32> to vector<8x32xf32>
    %165 = arith.mulf %163, %164 : vector<8x32xf32>
    %166 = vector.broadcast %145 : vector<1x32xf32> to vector<8x32xf32>
    %167 = arith.addf %165, %166 : vector<8x32xf32>
    %168 = arith.truncf %167 : vector<8x32xf32> to vector<8x32xbf16>
    %c1_71 = arith.constant 1 : index
    %c0_72 = arith.constant 0 : index
    %c0_73 = arith.constant 0 : index
    %169 = vector.load %arg7[%c1_71, %c0_72, %c0_73] : memref<2x32x128xbf16, #tpu.memory_space<vmem>>, vector<1x32x128xbf16>
    %170 = vector.shape_cast %169 : vector<1x32x128xbf16> to vector<32x128xbf16>
    %cst_74 = arith.constant dense<0.000000e+00> : vector<8x128xf32>
    %171 = tpu.matmul %168, %170, %cst_74 {dimension_numbers = #tpu.dot_dimension_numbers<[1], [0], [0], [1], [0, 0, 1, 1], [], []>} : vector<8x32xbf16>, vector<32x128xbf16>, vector<8x128xf32> -> vector<8x128xf32>
    %172 = vector.extract_strided_slice %171 {offsets = [0, 0], sizes = [8, 32], strides = [1, 1]} : vector<8x128xf32> to vector<8x32xf32>
    %173 = vector.extract_strided_slice %172 {offsets = [0, 0], sizes = [8, 8], strides = [1, 1]} : vector<8x32xf32> to vector<8x8xf32>
    %174 = vector.extract_strided_slice %172 {offsets = [0, 8], sizes = [8, 8], strides = [1, 1]} : vector<8x32xf32> to vector<8x8xf32>
    %175 = vector.extract_strided_slice %172 {offsets = [0, 16], sizes = [8, 8], strides = [1, 1]} : vector<8x32xf32> to vector<8x8xf32>
    %176 = vector.extract_strided_slice %172 {offsets = [0, 24], sizes = [8, 8], strides = [1, 1]} : vector<8x32xf32> to vector<8x8xf32>
    %177 = tpu.concatenate %173, %174, %175, %176 in 0 : vector<8x8xf32>, vector<8x8xf32>, vector<8x8xf32>, vector<8x8xf32> -> vector<32x8xf32>
    %178 = vector.shape_cast %177 : vector<32x8xf32> to vector<4x8x8xf32>
    %179 = arith.truncf %178 : vector<4x8x8xf32> to vector<4x8x8xbf16>
    %180 = vector.extract_strided_slice %171 {offsets = [0, 32], sizes = [8, 32], strides = [1, 1]} : vector<8x128xf32> to vector<8x32xf32>
    %181 = vector.extract_strided_slice %180 {offsets = [0, 0], sizes = [8, 8], strides = [1, 1]} : vector<8x32xf32> to vector<8x8xf32>
    %182 = vector.extract_strided_slice %180 {offsets = [0, 8], sizes = [8, 8], strides = [1, 1]} : vector<8x32xf32> to vector<8x8xf32>
    %183 = vector.extract_strided_slice %180 {offsets = [0, 16], sizes = [8, 8], strides = [1, 1]} : vector<8x32xf32> to vector<8x8xf32>
    %184 = vector.extract_strided_slice %180 {offsets = [0, 24], sizes = [8, 8], strides = [1, 1]} : vector<8x32xf32> to vector<8x8xf32>
    %185 = tpu.concatenate %181, %182, %183, %184 in 0 : vector<8x8xf32>, vector<8x8xf32>, vector<8x8xf32>, vector<8x8xf32> -> vector<32x8xf32>
    %186 = vector.shape_cast %185 : vector<32x8xf32> to vector<4x8x8xf32>
    %187 = arith.truncf %186 : vector<4x8x8xf32> to vector<4x8x8xbf16>
    %188 = vector.extract_strided_slice %171 {offsets = [0, 64], sizes = [8, 32], strides = [1, 1]} : vector<8x128xf32> to vector<8x32xf32>
    %189 = vector.extract_strided_slice %188 {offsets = [0, 0], sizes = [8, 8], strides = [1, 1]} : vector<8x32xf32> to vector<8x8xf32>
    %190 = vector.extract_strided_slice %188 {offsets = [0, 8], sizes = [8, 8], strides = [1, 1]} : vector<8x32xf32> to vector<8x8xf32>
    %191 = vector.extract_strided_slice %188 {offsets = [0, 16], sizes = [8, 8], strides = [1, 1]} : vector<8x32xf32> to vector<8x8xf32>
    %192 = vector.extract_strided_slice %188 {offsets = [0, 24], sizes = [8, 8], strides = [1, 1]} : vector<8x32xf32> to vector<8x8xf32>
    %193 = tpu.concatenate %189, %190, %191, %192 in 0 : vector<8x8xf32>, vector<8x8xf32>, vector<8x8xf32>, vector<8x8xf32> -> vector<32x8xf32>
    %194 = vector.shape_cast %193 : vector<32x8xf32> to vector<4x8x8xf32>
    %195 = arith.truncf %194 : vector<4x8x8xf32> to vector<4x8x8xbf16>
    %cst_75 = arith.constant dense<0.000000e+00> : vector<4x8x8xf32>
    %196 = tpu.matmul %179, %187, %cst_75 {dimension_numbers = #tpu.dot_dimension_numbers<[2], [2], [1], [1], [0, 0, 0, 1, 1, 1], [0], [0]>} : vector<4x8x8xbf16>, vector<4x8x8xbf16>, vector<4x8x8xf32> -> vector<4x8x8xf32>
    %197 = vector.shape_cast %11 : vector<8x8xf32> to vector<1x8x8xf32>
    %198 = vector.broadcast %197 : vector<1x8x8xf32> to vector<4x8x8xf32>
    %199 = arith.addf %196, %198 : vector<4x8x8xf32>
    %cst_76 = arith.constant dense<0xFF800000> : vector<4x8xf32>
    %200 = vector.multi_reduction <maximumf>, %199, %cst_76 [2] : vector<4x8x8xf32> to vector<4x8xf32>
    %201 = vector.shape_cast %200 : vector<4x8xf32> to vector<4x8x1xf32>
    %202 = vector.broadcast %201 : vector<4x8x1xf32> to vector<4x8x8xf32>
    %203 = arith.subf %199, %202 : vector<4x8x8xf32>
    %204 = math.exp %203 : vector<4x8x8xf32>
    %cst_77 = arith.constant dense<0.000000e+00> : vector<4x8xf32>
    %205 = vector.multi_reduction <add>, %204, %cst_77 [2] : vector<4x8x8xf32> to vector<4x8xf32>
    %206 = vector.shape_cast %205 : vector<4x8xf32> to vector<4x8x1xf32>
    %207 = tpu.reciprocal %206 {approx = true} : vector<4x8x1xf32> -> vector<4x8x1xf32>
    %208 = vector.broadcast %207 : vector<4x8x1xf32> to vector<4x8x8xf32>
    %209 = arith.mulf %204, %208 : vector<4x8x8xf32>
    %210 = arith.truncf %209 : vector<4x8x8xf32> to vector<4x8x8xbf16>
    %cst_78 = arith.constant dense<0.000000e+00> : vector<4x8x8xf32>
    %211 = tpu.matmul %210, %195, %cst_78 {dimension_numbers = #tpu.dot_dimension_numbers<[2], [1], [1], [2], [0, 0, 0, 1, 1, 2], [0], [0]>} : vector<4x8x8xbf16>, vector<4x8x8xbf16>, vector<4x8x8xf32> -> vector<4x8x8xf32>
    %212 = vector.shape_cast %211 : vector<4x8x8xf32> to vector<32x8xf32>
    %213 = vector.extract_strided_slice %212 {offsets = [0, 0], sizes = [8, 8], strides = [1, 1]} : vector<32x8xf32> to vector<8x8xf32>
    %214 = vector.extract_strided_slice %212 {offsets = [8, 0], sizes = [8, 8], strides = [1, 1]} : vector<32x8xf32> to vector<8x8xf32>
    %215 = vector.extract_strided_slice %212 {offsets = [16, 0], sizes = [8, 8], strides = [1, 1]} : vector<32x8xf32> to vector<8x8xf32>
    %216 = vector.extract_strided_slice %212 {offsets = [24, 0], sizes = [8, 8], strides = [1, 1]} : vector<32x8xf32> to vector<8x8xf32>
    %217 = tpu.concatenate %213, %214, %215, %216 in 1 : vector<8x8xf32>, vector<8x8xf32>, vector<8x8xf32>, vector<8x8xf32> -> vector<8x32xf32>
    %218 = arith.truncf %217 : vector<8x32xf32> to vector<8x32xbf16>
    %c1_79 = arith.constant 1 : index
    %c0_80 = arith.constant 0 : index
    %c0_81 = arith.constant 0 : index
    %219 = vector.load %arg8[%c1_79, %c0_80, %c0_81] : memref<2x32x32xbf16, #tpu.memory_space<vmem>>, vector<1x32x32xbf16>
    %220 = vector.shape_cast %219 : vector<1x32x32xbf16> to vector<32x32xbf16>
    %cst_82 = arith.constant dense<0.000000e+00> : vector<8x32xf32>
    %221 = tpu.matmul %218, %220, %cst_82 {dimension_numbers = #tpu.dot_dimension_numbers<[1], [0], [0], [1], [0, 0, 1, 1], [], []>} : vector<8x32xbf16>, vector<32x32xbf16>, vector<8x32xf32> -> vector<8x32xf32>
    %c1_83 = arith.constant 1 : index
    %c0_84 = arith.constant 0 : index
    %c0_85 = arith.constant 0 : index
    %222 = vector.load %arg9[%c1_83, %c0_84, %c0_85] : memref<2x1x32xf32, #tpu.memory_space<vmem>>, vector<1x1x32xf32>
    %223 = vector.shape_cast %222 : vector<1x1x32xf32> to vector<1x32xf32>
    %224 = vector.broadcast %223 : vector<1x32xf32> to vector<8x32xf32>
    %225 = arith.addf %221, %224 : vector<8x32xf32>
    %226 = arith.addf %141, %225 : vector<8x32xf32>
    %c1_86 = arith.constant 1 : index
    %c0_87 = arith.constant 0 : index
    %c0_88 = arith.constant 0 : index
    %227 = vector.load %arg10[%c1_86, %c0_87, %c0_88] : memref<2x1x32xf32, #tpu.memory_space<vmem>>, vector<1x1x32xf32>
    %228 = vector.shape_cast %227 : vector<1x1x32xf32> to vector<1x32xf32>
    %c1_89 = arith.constant 1 : index
    %c0_90 = arith.constant 0 : index
    %c0_91 = arith.constant 0 : index
    %229 = vector.load %arg11[%c1_89, %c0_90, %c0_91] : memref<2x1x32xf32, #tpu.memory_space<vmem>>, vector<1x1x32xf32>
    %230 = vector.shape_cast %229 : vector<1x1x32xf32> to vector<1x32xf32>
    %cst_92 = arith.constant dense<0.000000e+00> : vector<8xf32>
    %231 = vector.multi_reduction <add>, %226, %cst_92 [1] : vector<8x32xf32> to vector<8xf32>
    %232 = vector.shape_cast %231 : vector<8xf32> to vector<8x1xf32>
    %cst_93 = arith.constant 3.200000e+01 : f32
    %233 = vector.broadcast %cst_93 : f32 to vector<8x1xf32>
    %234 = arith.divf %232, %233 : vector<8x1xf32>
    %235 = vector.broadcast %234 : vector<8x1xf32> to vector<8x32xf32>
    %236 = arith.subf %226, %235 : vector<8x32xf32>
    %237 = arith.mulf %236, %236 : vector<8x32xf32>
    %cst_94 = arith.constant dense<0.000000e+00> : vector<8xf32>
    %238 = vector.multi_reduction <add>, %237, %cst_94 [1] : vector<8x32xf32> to vector<8xf32>
    %239 = vector.shape_cast %238 : vector<8xf32> to vector<8x1xf32>
    %cst_95 = arith.constant 3.200000e+01 : f32
    %240 = vector.broadcast %cst_95 : f32 to vector<8x1xf32>
    %241 = arith.divf %239, %240 : vector<8x1xf32>
    %242 = vector.broadcast %234 : vector<8x1xf32> to vector<8x32xf32>
    %243 = arith.subf %226, %242 : vector<8x32xf32>
    %cst_96 = arith.constant 9.99999974E-6 : f32
    %244 = vector.broadcast %cst_96 : f32 to vector<8x1xf32>
    %245 = arith.addf %241, %244 : vector<8x1xf32>
    %246 = math.rsqrt %245 : vector<8x1xf32>
    %247 = vector.broadcast %246 : vector<8x1xf32> to vector<8x32xf32>
    %248 = arith.mulf %243, %247 : vector<8x32xf32>
    %249 = vector.broadcast %228 : vector<1x32xf32> to vector<8x32xf32>
    %250 = arith.mulf %248, %249 : vector<8x32xf32>
    %251 = vector.broadcast %230 : vector<1x32xf32> to vector<8x32xf32>
    %252 = arith.addf %250, %251 : vector<8x32xf32>
    %253 = arith.truncf %252 : vector<8x32xf32> to vector<8x32xbf16>
    %c1_97 = arith.constant 1 : index
    %c0_98 = arith.constant 0 : index
    %c0_99 = arith.constant 0 : index
    %254 = vector.load %arg12[%c1_97, %c0_98, %c0_99] : memref<2x32x128xbf16, #tpu.memory_space<vmem>>, vector<1x32x128xbf16>
    %255 = vector.shape_cast %254 : vector<1x32x128xbf16> to vector<32x128xbf16>
    %cst_100 = arith.constant dense<0.000000e+00> : vector<8x128xf32>
    %256 = tpu.matmul %253, %255, %cst_100 {dimension_numbers = #tpu.dot_dimension_numbers<[1], [0], [0], [1], [0, 0, 1, 1], [], []>} : vector<8x32xbf16>, vector<32x128xbf16>, vector<8x128xf32> -> vector<8x128xf32>
    %c1_101 = arith.constant 1 : index
    %c0_102 = arith.constant 0 : index
    %c0_103 = arith.constant 0 : index
    %257 = vector.load %arg13[%c1_101, %c0_102, %c0_103] : memref<2x1x128xf32, #tpu.memory_space<vmem>>, vector<1x1x128xf32>
    %258 = vector.shape_cast %257 : vector<1x1x128xf32> to vector<1x128xf32>
    %259 = vector.broadcast %258 : vector<1x128xf32> to vector<8x128xf32>
    %260 = arith.addf %256, %259 : vector<8x128xf32>
    %cst_104 = arith.constant 0.000000e+00 : f32
    %261 = vector.broadcast %cst_104 : f32 to vector<8x128xf32>
    %262 = arith.maximumf %260, %261 : vector<8x128xf32>
    %263 = arith.truncf %262 : vector<8x128xf32> to vector<8x128xbf16>
    %c1_105 = arith.constant 1 : index
    %c0_106 = arith.constant 0 : index
    %c0_107 = arith.constant 0 : index
    %264 = vector.load %arg14[%c1_105, %c0_106, %c0_107] : memref<2x128x32xbf16, #tpu.memory_space<vmem>>, vector<1x128x32xbf16>
    %265 = vector.shape_cast %264 : vector<1x128x32xbf16> to vector<128x32xbf16>
    %cst_108 = arith.constant dense<0.000000e+00> : vector<8x32xf32>
    %266 = tpu.matmul %263, %265, %cst_108 {dimension_numbers = #tpu.dot_dimension_numbers<[1], [0], [0], [1], [0, 0, 1, 1], [], []>} : vector<8x128xbf16>, vector<128x32xbf16>, vector<8x32xf32> -> vector<8x32xf32>
    %c1_109 = arith.constant 1 : index
    %c0_110 = arith.constant 0 : index
    %c0_111 = arith.constant 0 : index
    %267 = vector.load %arg15[%c1_109, %c0_110, %c0_111] : memref<2x1x32xf32, #tpu.memory_space<vmem>>, vector<1x1x32xf32>
    %268 = vector.shape_cast %267 : vector<1x1x32xf32> to vector<1x32xf32>
    %269 = vector.broadcast %268 : vector<1x32xf32> to vector<8x32xf32>
    %270 = arith.addf %266, %269 : vector<8x32xf32>
    %271 = arith.addf %226, %270 : vector<8x32xf32>
    %272 = arith.truncf %271 : vector<8x32xf32> to vector<8x32xbf16>
    %c0_112 = arith.constant 0 : index
    %c0_113 = arith.constant 0 : index
    %273 = vector.load %arg16[%c0_112, %c0_113] : memref<32x128xbf16, #tpu.memory_space<vmem>>, vector<32x128xbf16>
    %cst_114 = arith.constant dense<0.000000e+00> : vector<8x128xf32>
    %274 = tpu.matmul %272, %273, %cst_114 {dimension_numbers = #tpu.dot_dimension_numbers<[1], [0], [0], [1], [0, 0, 1, 1], [], []>} : vector<8x32xbf16>, vector<32x128xbf16>, vector<8x128xf32> -> vector<8x128xf32>
    %c0_115 = arith.constant 0 : index
    %c0_116 = arith.constant 0 : index
    %275 = vector.load %arg17[%c0_115, %c0_116] : memref<1x128xf32, #tpu.memory_space<vmem>>, vector<1x128xf32>
    %276 = vector.broadcast %275 : vector<1x128xf32> to vector<8x128xf32>
    %277 = arith.addf %274, %276 : vector<8x128xf32>
    %c0_117 = arith.constant 0 : index
    %c0_118 = arith.constant 0 : index
    %278 = vector.load %arg18[%c0_117, %c0_118] : memref<8x128xf32, #tpu.memory_space<vmem>>, vector<8x128xf32>
    tpu.vector_store %arg18[%c0_117, %c0_118], %277 {strides = array<i32>} : memref<8x128xf32, #tpu.memory_space<vmem>>, vector<8x128xf32>,
    return
  }
  func.func @transform_0(%arg0: i32) -> (i32, i32) {
    %c0_i32 = arith.constant 0 : i32
    %c0_i32_0 = arith.constant 0 : i32
    return %arg0, %c0_i32 : i32, i32
  }
  func.func @transform_1(%arg0: i32) -> (i32, i32) {
    %c0_i32 = arith.constant 0 : i32
    %c0_i32_0 = arith.constant 0 : i32
    %c0_i32_1 = arith.constant 0 : i32
    return %c0_i32, %c0_i32_0 : i32, i32
  }
  func.func @transform_2(%arg0: i32) -> (i32, i32) {
    %c0_i32 = arith.constant 0 : i32
    %c0_i32_0 = arith.constant 0 : i32
    %c0_i32_1 = arith.constant 0 : i32
    return %c0_i32, %c0_i32_0 : i32, i32
  }
  func.func @transform_3(%arg0: i32) -> (i32, i32) {
    %c0_i32 = arith.constant 0 : i32
    %c0_i32_0 = arith.constant 0 : i32
    %c0_i32_1 = arith.constant 0 : i32
    return %c0_i32, %c0_i32_0 : i32, i32
  }
  func.func @transform_4(%arg0: i32) -> (i32, i32, i32) {
    %c0_i32 = arith.constant 0 : i32
    %c0_i32_0 = arith.constant 0 : i32
    %c0_i32_1 = arith.constant 0 : i32
    %c0_i32_2 = arith.constant 0 : i32
    return %c0_i32, %c0_i32_0, %c0_i32_1 : i32, i32, i32
  }
  func.func @transform_5(%arg0: i32) -> (i32, i32, i32) {
    %c0_i32 = arith.constant 0 : i32
    %c0_i32_0 = arith.constant 0 : i32
    %c0_i32_1 = arith.constant 0 : i32
    %c0_i32_2 = arith.constant 0 : i32
    return %c0_i32, %c0_i32_0, %c0_i32_1 : i32, i32, i32
  }
  func.func @transform_6(%arg0: i32) -> (i32, i32, i32) {
    %c0_i32 = arith.constant 0 : i32
    %c0_i32_0 = arith.constant 0 : i32
    %c0_i32_1 = arith.constant 0 : i32
    %c0_i32_2 = arith.constant 0 : i32
    return %c0_i32, %c0_i32_0, %c0_i32_1 : i32, i32, i32
  }
  func.func @transform_7(%arg0: i32) -> (i32, i32, i32) {
    %c0_i32 = arith.constant 0 : i32
    %c0_i32_0 = arith.constant 0 : i32
    %c0_i32_1 = arith.constant 0 : i32
    %c0_i32_2 = arith.constant 0 : i32
    return %c0_i32, %c0_i32_0, %c0_i32_1 : i32, i32, i32
  }
  func.func @transform_8(%arg0: i32) -> (i32, i32, i32) {
    %c0_i32 = arith.constant 0 : i32
    %c0_i32_0 = arith.constant 0 : i32
    %c0_i32_1 = arith.constant 0 : i32
    %c0_i32_2 = arith.constant 0 : i32
    return %c0_i32, %c0_i32_0, %c0_i32_1 : i32, i32, i32
  }
  func.func @transform_9(%arg0: i32) -> (i32, i32, i32) {
    %c0_i32 = arith.constant 0 : i32
    %c0_i32_0 = arith.constant 0 : i32
    %c0_i32_1 = arith.constant 0 : i32
    %c0_i32_2 = arith.constant 0 : i32
    return %c0_i32, %c0_i32_0, %c0_i32_1 : i32, i32, i32
  }
  func.func @transform_10(%arg0: i32) -> (i32, i32, i32) {
    %c0_i32 = arith.constant 0 : i32
    %c0_i32_0 = arith.constant 0 : i32
    %c0_i32_1 = arith.constant 0 : i32
    %c0_i32_2 = arith.constant 0 : i32
    return %c0_i32, %c0_i32_0, %c0_i32_1 : i32, i32, i32
  }
  func.func @transform_11(%arg0: i32) -> (i32, i32, i32) {
    %c0_i32 = arith.constant 0 : i32
    %c0_i32_0 = arith.constant 0 : i32
    %c0_i32_1 = arith.constant 0 : i32
    %c0_i32_2 = arith.constant 0 : i32
    return %c0_i32, %c0_i32_0, %c0_i32_1 : i32, i32, i32
  }
  func.func @transform_12(%arg0: i32) -> (i32, i32, i32) {
    %c0_i32 = arith.constant 0 : i32
    %c0_i32_0 = arith.constant 0 : i32
    %c0_i32_1 = arith.constant 0 : i32
    %c0_i32_2 = arith.constant 0 : i32
    return %c0_i32, %c0_i32_0, %c0_i32_1 : i32, i32, i32
  }
  func.func @transform_13(%arg0: i32) -> (i32, i32, i32) {
    %c0_i32 = arith.constant 0 : i32
    %c0_i32_0 = arith.constant 0 : i32
    %c0_i32_1 = arith.constant 0 : i32
    %c0_i32_2 = arith.constant 0 : i32
    return %c0_i32, %c0_i32_0, %c0_i32_1 : i32, i32, i32
  }
  func.func @transform_14(%arg0: i32) -> (i32, i32, i32) {
    %c0_i32 = arith.constant 0 : i32
    %c0_i32_0 = arith.constant 0 : i32
    %c0_i32_1 = arith.constant 0 : i32
    %c0_i32_2 = arith.constant 0 : i32
    return %c0_i32, %c0_i32_0, %c0_i32_1 : i32, i32, i32
  }
  func.func @transform_15(%arg0: i32) -> (i32, i32) {
    %c0_i32 = arith.constant 0 : i32
    %c0_i32_0 = arith.constant 0 : i32
    %c0_i32_1 = arith.constant 0 : i32
    return %c0_i32, %c0_i32_0 : i32, i32
  }
  func.func @transform_16(%arg0: i32) -> (i32, i32) {
    %c0_i32 = arith.constant 0 : i32
    %c0_i32_0 = arith.constant 0 : i32
    %c0_i32_1 = arith.constant 0 : i32
    return %c0_i32, %c0_i32_0 : i32, i32
  }
  func.func @transform_17(%arg0: i32) -> (i32, i32) {
    %c0_i32 = arith.constant 0 : i32
    %c0_i32_0 = arith.constant 0 : i32
    return %arg0, %c0_i32 : i32, i32
  }
}

</mosaic_0001>

<bundles_post_ra>
// kernel: tpu_custom_call.1
= control target key start
LH: loop header
LB: loop body
LE: loop exit
PB: predicated region body
PF: predicated region fallthrough
CT: control target
= control target key end

     0   :  { %s2643_s0 = inlined_call_operand.vmem [shape: s32[16,1], index: 0, kind: input, shape index: {}]   ;;  %s2644_s1 = inlined_call_operand.vmem [shape: f32[64,32], index: 1, kind: input, shape index: {}]   ;;  %s2645_s2 = inlined_call_operand.vmem [shape: f32[8,32], index: 2, kind: input, shape index: {}]   ;;  %s2646_s3 = inlined_call_operand.vmem [shape: f32[8,8], index: 3, kind: input, shape index: {}]   ;;  %s2647_s4 = inlined_call_operand.vmem [shape: f32[2,1,32], index: 4, kind: input, shape index: {}]   ;;  %s2648_s5 = inlined_call_operand.vmem [shape: f32[2,1,32], index: 5, kind: input, shape index: {}]   ;;  %s2649_s6 = inlined_call_operand.vmem [shape: bf16[2,32,128], index: 6, kind: input, shape index: {}]   ;;  %s2650_s7 = inlined_call_operand.vmem [shape: bf16[2,32,32], index: 7, kind: input, shape index: {}]   ;;  %s2651_s8 = inlined_call_operand.vmem [shape: f32[2,1,32], index: 8, kind: input, shape index: {}]   ;;  %s2652_s9 = inlined_call_operand.vmem [shape: f32[2,1,32], index: 9, kind: input, shape index: {}]   ;;  %s2653_s10 = inlined_call_operand.vmem [shape: f32[2,1,32], index: 10, kind: input, shape index: {}]   ;;  %s2654_s11 = inlined_call_operand.vmem [shape: bf16[2,32,128], index: 11, kind: input, shape index: {}]   ;;  %s2655_s12 = inlined_call_operand.vmem [shape: f32[2,1,128], index: 12, kind: input, shape index: {}]   ;;  %s2656_s13 = inlined_call_operand.vmem [shape: bf16[2,128,32], index: 13, kind: input, shape index: {}]   ;;  %s2657_s14 = inlined_call_operand.vmem [shape: f32[2,1,32], index: 14, kind: input, shape index: {}]   ;;  %s2658_s15 = inlined_call_operand.vmem [shape: bf16[32,128], index: 15, kind: input, shape index: {}]   ;;  %s2659_s16 = inlined_call_operand.vmem [shape: f32[1,128], index: 16, kind: input, shape index: {}]   ;;  %s2660_s17 = inlined_call_operand.hbm [shape: f32[16,128], index: 17, kind: output, shape index: {}]  }
   0x1   :  { %2673 = sst [smem:[#allocation11_spill]] %s2643_s0 }
   0x2   :  { %2674 = sst [smem:[#allocation12_spill]] %s2644_s1 }
   0x3   :  { %2675 = sst [smem:[#allocation13_spill]] %s2645_s2 }
   0x4   :  { %2676 = sst [smem:[#allocation14_spill]] %s2646_s3 }
   0x5   :  { %2677 = sst [smem:[#allocation15_spill]] %s2659_s16 }
   0x6   :  { %22 = vsyncpa [#allocation3], 0 }
   0x7   :  { %24 = vsyncpa [#allocation3 + $0x1], 0  ;;  %s2241_s24 = smov 0   ;;  %s2243_s25 = smov 0  }
   0x8   :  { %s2245_s26 = smov 0   ;;  %s2247_s27 = smov 0  }
   0x9 LB: > { %2678 = sst [smem:[#allocation5_spill]] %s2126_s24  ;;  %s2262_s28 = sadd.s32 4294967295, %s2138_s27   ;;  %s2138_s27 = sphi %s2247_s27, %s2698_s27   ;;  %s2134_s26 = sphi %s2245_s26, %s2700_s26   ;;  %s2130_s25 = sphi %s2243_s25, %s2702_s25   ;;  %s2126_s24 = sphi %s2241_s24, %s2701_s24  }
   0xa   : > { %2679 = sst [smem:[#allocation6_spill]] %s2134_s26  ;;  %s1749_s29 = sadd.s32 4294967294, %s2138_s27  }
   0xb   : > { %2680 = sst [smem:[#allocation7_spill]] %s2138_s27  ;;  %s2266_s0 = sadd.s32 1, %s2138_s27  }
   0xc   : > { %2681 = sst [smem:[#allocation8_spill]] %s2266_s0  ;;  %s399_s30 = sadd.s32 1, %s2134_s26 }
   0xd   : > { %s396_s18 = ssub.s32 %s2138_s27, %s2266_s0  ;;  %p409_p0 = scmp.ne.s32.totalorder %s2134_s26, %s2130_s25 }
   0xe   : > { %p397_p1 = scmp.eq.s32.totalorder %s396_s18, 0  ;;  %p410_p2 = scmp.eq.s32.totalorder %s2262_s28, 1 }
   0xf   : > { %p415_p3 = scmp.ne.s32.totalorder %s2130_s25, %s2126_s24  ;;  %p416_p4 = scmp.eq.s32.totalorder %s1749_s29, 1 }
  0x10   : > { %s2277_s19 = scalar_select %p397_p1, %s2134_s26, %s399_s30  }
  0x11   : > { %p2279_p5 = por %p410_p2, %p409_p0  ;;  %p2283_p6 = por %p416_p4, %p415_p3 }
  0x12   : > { %2682 = sst [smem:[#allocation9_spill]] %s2277_s19  ;;  %p1752_p7 = scmp.ge.s32.totalorder %s2138_s27, 1 }
  0x13   : > { %s2684_s20 = scalar_select %p2283_p6, 1, 0 }
  0x14   : > { %p489_p8 = scmp.lt.s32.totalorder %s2138_s27, 3 }
  0x15   : > { %2685 = sst [smem:[#allocation10_spill]] %s2684_s20 }
  0x16   : > { %p490_p9 = pnand %p1752_p7, %p489_p8 }
  0x17   : > { %p540_p10 = scmp.lt.s32.totalorder (!%p490_p9), %s2262_s28, 1  ;;  %s2686_s23 = sld [smem:[#allocation12_spill]] (!%p490_p9) }
  0x18   : > { %493 = sbr.rel (%p490_p9) target bundleno = 4305 (0x10d1), region = 88  ;;  %s2687_s27 = sld [smem:[#allocation11_spill]] (!%p490_p9) }
  0x19   : > { %s2688_s2 = sld [smem:[#allocation13_spill]] (!%p490_p9)  ;;  %s2144_s21 = smov (!%p490_p9), 120  }
  0x1a   : > { %s2689_s3 = sld [smem:[#allocation14_spill]] (!%p490_p9)  ;;  %s2671_s29 = smov (!%p490_p9), 64  }
  0x1b   : > { %s2670_s30 = smov (!%p490_p9), 16   ;;  %s2669_s26 = smov (!%p490_p9), 8  }
  0x1c   : > { %s2668_s19 = smov (!%p490_p9), 24   ;;  %s2096_s0 = scalar_lea.hbm (!%p490_p9), %s2660_s17, 16 }
  0x1d   : > { %v560_v0 = vld [vmem:[%s2686_s23 + $0x38] sm:$0xff]  ;;  %v559_v1 = vld [vmem:[%s2686_s23 + $0x30] sm:$0xff]  ;;  %v2140_v2 = vmov 0   ;;  %s541_s18 = scalar_select %p540_p10, %s2262_s28, 1  ;;  %v558_v3 = vld [vmem:[%s2686_s23 + $0x28] sm:$0xff]  ;;  %v546_v10 = vlaneseq  ;;  %vm562_vm0 = vcmask 523264  }
  0x1e   : > { %2018 = vset.pattern.permute.xlu0 %v2140_v2  ;;  %574 = vmatpush.msra.mxu0 %v560_v0  ;;  %v557_v4 = vld [vmem:[%s2686_s23 + $0x20] sm:$0xff]  ;;  %v556_v5 = vld [vmem:[%s2686_s23 + $0x18] sm:$0xff]  ;;  %v555_v7 = vld [vmem:[%s2686_s23 + $0x10] sm:$0xff]  ;;  %v2141_v13 = vmov 0.0   ;;  %vm589_vm2 = vcmask 261120   ;;  %v2142_v19 = vmov 32.0  }
  0x1f   : > { %s1754_s24 = sshll.u32 %s541_s18, 3  ;;  %v554_v8 = vld [vmem:[%s2686_s23 + $0x8] sm:$0xff]  ;;  %v553_v9 = vld [vmem:[%s2686_s23] sm:$0xff]  ;;  %v547_v11 = vand.u32 127, %v546_v10  ;;  %2034 = vrcp.f32 %v2142_v19  ;;  %s2143_s18 = smov 112   ;;  %vm679_vm7 = vcmask 64512  }
  0x20   : > { %575 = vmatpush.msra.mxu0 %v559_v1  ;;  %s543_s16 = scalar_lea.vmem %s2687_s27, %s1754_s24  ;;  %v561_v15 = vld [vmem:[%s2688_s2] sm:$0xff]  ;;  %v1939_v31 = vld [vmem:[%s2649_s6 + $0x8] sm:$0xff]  ;;  %s2146_s24 = smov 96   ;;  %vm824_vm8 = vcmask 1043456   ;;  %vm917_vm9 = vcmask 130048   ;;  %vm919_vm10 = vcmask 195584  }
  0x21   : > { %v545_v6 = vld [vmem:[%s543_s16] sm:$0xff]  ;;  %653 = vmatpush.bf16.msra.mxu3 %v1939_v31  ;;  %s2145_s16 = smov 104  }
  0x22   : > { %576 = vmatpush.msra.mxu0 %v558_v3  ;;  %549 = vperm.xlu0 %2018, %v545_v6   ;;  %v1938_v32 = vld [vmem:[%s2649_s6] sm:$0xff] }
  0x23   : > { %v2019_v42 = vld [vmem:[%s2647_s4] ss:$0 sm:$0xff] }
  0x24   : > { %577 = vmatpush.msra.mxu0 %v557_v4  ;;  %v2020_v45 = vld [vmem:[%s2648_s5] ss:$0 sm:$0xff] }
  0x25   : > { %v2035_v20 = vpop.eup %2034  ;;  %654 = vmatpush.bf16.msra.mxu3 %v1938_v32 }
  0x26   : > { %578 = vmatpush.msra.mxu0 %v556_v5  ;;  %v594_v21 = vmul.f32 32.0, %v2035_v20  ;;  %vm598_vm3 = vweird.f32 %v2035_v20 }
  0x28   : > { %579 = vmatpush.msra.mxu0 %v555_v7  ;;  %v595_v22 = vsub.f32 1.0, %v594_v21 }
  0x2a   : > { %580 = vmatpush.msra.mxu0 %v554_v8  ;;  %v596_v23 = vmul.f32 %v2035_v20, %v595_v22 }
  0x2c   : > { %581 = vmatpush.msra.mxu0 %v553_v9  ;;  %v597_v24 = vadd.f32 %v2035_v20, %v596_v23 }
  0x2e   : > { %v2325_v25 = vsel %vm598_vm3, %v2035_v20, %v597_v24 }
  0x94   : > { %v550_v12 = vpop.permute.xlu0 %549 }
  0x95   : > { %vm551_vm1 = vcmp.eq.s32.totalorder %v547_v11, %v550_v12  ;;  %v2368_v12 = vld [vmem:[%s2689_s3] sm:$0xff] }
  0x96   : > { %v552_v14 = vsel %vm551_vm1, 1.0, %v2141_v13 }
  0x97   : > { %1755 = vmatmul.msk.f32.vlgmr.msra.gmra.mxu0 %vm562_vm0, %v552_v14 }
 0x114   : > { %v583_v16 = vpop.f32.mrf.mxu0 }
 0x115   : > { %v2321_v17 = vadd.f32 %v583_v16, %v561_v15 }
 0x117   : > { %v590_v18 = vsel %vm589_vm2, %v2321_v17, 0.0 }
 0x118   : > { %591 = vadd.xlane.f32.xlu0 %v590_v18 }
 0x18b   : > { %v592_v26 = vpop.xlane.xlu0 %591 }
 0x18c   : > { %v600_v27 = vmul.f32 %v2325_v25, %v592_v26 }
 0x18e   : > { %v601_v28 = vsub.f32 %v2321_v17, %v600_v27 }
 0x190   : > { %v602_v29 = vmul.f32 %v601_v28, %v601_v28 }
 0x192   : > { %v603_v30 = vsel %vm589_vm2, %v602_v29, 0.0 }
 0x193   : > { %604 = vadd.xlane.f32.xlu1 %v603_v30 }
 0x206   : > { %v605_v33 = vpop.xlane.xlu1 %604 }
 0x207   : > { %v606_v34 = vmul.f32 %v605_v33, %v2325_v25 }
 0x209   : > { %v607_v35 = vadd.f32 1e-05, %v606_v34 }
 0x20b   : > { %2036 = vrsqrt.f32 %v607_v35  ;;  %vm614_vm5 = vweird.f32 %v607_v35 }
 0x211   : > { %v2037_v36 = vpop.eup %2036 }
 0x212   : > { %v609_v37 = vmul.f32 %v2037_v36, %v607_v35  ;;  %vm615_vm4 = vweird.f32 %v2037_v36 }
 0x213   : > { %vm616_vm6 = vmor %vm614_vm5, %vm615_vm4 }
 0x214   : > { %v610_v38 = vmul.f32 %v2037_v36, %v609_v37 }
 0x216   : > { %v611_v39 = vmul.f32 0.5, %v610_v38 }
 0x218   : > { %v612_v40 = vsub.f32 1.5, %v611_v39 }
 0x21a   : > { %v613_v41 = vmul.f32 %v2037_v36, %v612_v40 }
 0x21c   : > { %v617_v43 = vsel %vm616_vm6, %v2037_v36, %v613_v41 }
 0x21d   : > { %v618_v44 = vmul.f32 %v617_v43, %v601_v28 }
 0x21f   : > { %v622_v46 = vmul.f32 %v2019_v42, %v618_v44 }
 0x221   : > { %v626_v47 = vadd.f32 %v2020_v45, %v622_v46 }
 0x223   : > { %v627_v48 = vpack.c.bf16 %v626_v47, %v626_v47 }
 0x225   : > { %1764 = vmatmul.msk.bf16.vlgmr.msra.gmra.mxu3 %vm589_vm2, %v627_v48 }
 0x2a8   : > { %v656_v49 = vpop.f32.mrf.mxu3 }
 0x2a9   : > { %v670_v50 = vpack.c.bf16 %v656_v49, %v656_v49  ;;  %664 = vrot.lane.b32.xlu2 %v656_v49, %s2143_s18  ;;  %661 = vrot.lane.b32.xlu1 %v656_v49, %s2144_s21 }
 0x2ab   : > { %v675_v51 = vunpack.c.l.b16 %v670_v50 }
 0x2ad   : > { %v676_v52 = vpack.c.b16 %v675_v51, %v675_v51 }
 0x2b0   : > { %v658_v53 = vpop.f32.mrf.mxu3 }
 0x2b1   : > { %667 = vrot.lane.b32.xlu2 %v656_v49, %s2145_s16  ;;  %677 = vrot.lane.b32.xlu1 %v676_v52, %s2146_s24 }
 0x303   : > { %v665_v54 = vpop.permute.xlu2 %664 }
 0x304   : > { %v672_v58 = vpack.c.bf16 %v665_v54, %v665_v54 }
 0x306   : > { %v724_v61 = vunpack.c.l.b16 %v672_v58 }
 0x308   : > { %v725_v0 = vpack.c.b16 %v724_v61, %v724_v61 }
 0x30b   : > { %v668_v63 = vpop.permute.xlu2 %667 }
 0x30c   : > { %v673_v1 = vpack.c.bf16 %v668_v63, %v668_v63 }
 0x30e   : > { %v748_v2 = vunpack.c.l.b16 %v673_v1 }
 0x310   : > { %v2355_v3 = vpack.c.b16 %v748_v2, %v748_v2 }
 0x31b   : > { %v662_v55 = vpop.permute.xlu1 %661 }
 0x31c   : > { %v671_v56 = vpack.c.bf16 %v662_v55, %v662_v55 }
 0x31e   : > { %v700_v57 = vunpack.c.l.b16 %v671_v56 }
 0x320   : > { %v2348_v59 = vpack.c.b16 %v700_v57, %v700_v57 }
 0x322   : > { %702 = vrot.lane.b32.xlu2 %v2348_v59, %s2146_s24 }
 0x323   : > { %v678_v60 = vpop.permute.xlu1 %677 }
 0x324   : > { %v684_v62 = vsel %vm679_vm7, %v678_v60, 0 }
 0x325   : > { %693 = vmatpush.bf16.xpose.msra.mxu2 %v684_v62 }
 0x32a   : > { %726 = vrot.lane.b32.xlu2 %v725_v0, %s2146_s24 }
 0x32c   : > { %1765 = vmatmul.msk.bf16.vlgmr.msra.gmra.mxu2 %vm679_vm7, %v670_v50 }
 0x332   : > { %750 = vrot.lane.b32.xlu2 %v2355_v3, %s2146_s24 }
 0x37c   : > { %v703_v4 = vpop.permute.xlu2 %702 }
 0x37d   : > { %v708_v5 = vsel %vm679_vm7, %v703_v4, 0 }
 0x37e   : > { %717 = vmatpush.bf16.xpose.msrb.mxu3 %v708_v5 }
 0x384   : > { %v727_v6 = vpop.permute.xlu2 %726 }
 0x385   : > { %1766 = vmatmul.msk.bf16.vlgmr.msrb.gmra.mxu3 %vm679_vm7, %v671_v56  ;;  %v732_v7 = vsel %vm679_vm7, %v727_v6, 0 }
 0x386   : > { %741 = vmatpush.bf16.xpose.msrb.mxu0 %v732_v7 }
 0x38c   : > { %v751_v8 = vpop.permute.xlu2 %750 }
 0x38d   : > { %1767 = vmatmul.msk.bf16.vlgmr.msrb.gmra.mxu0 %vm679_vm7, %v672_v58  ;;  %v756_v9 = vsel %vm679_vm7, %v751_v8, 0 }
 0x38e   : > { %765 = vmatpush.bf16.xpose.msra.mxu1 %v756_v9 }
 0x395   : > { %1768 = vmatmul.msk.bf16.vlgmr.msra.gmra.mxu1 %vm679_vm7, %v673_v1 }
 0x3af   : > { %v695_v10 = vpop.f32.mrf.mxu2 }
 0x3b0   : > { %v696_v26 = vadd.f32 %v695_v10, %v2368_v12 }
 0x3b2   : > { %v771_v28 = vsel %vm679_vm7, %v696_v26, -inf }
 0x3b7   : > { %v697_v11 = vpop.f32.mrf.mxu2 }
 0x408   : > { %v719_v13 = vpop.f32.mrf.mxu3 }
 0x409   : > { %v720_v14 = vadd.f32 %v719_v13, %v2368_v12 }
 0x40a   : > { %v743_v15 = vpop.f32.mrf.mxu0 }
 0x40b   : > { %v744_v16 = vadd.f32 %v743_v15, %v2368_v12  ;;  %v774_v18 = vsel %vm679_vm7, %v720_v14, -inf }
 0x40c   : > { %775 = vmax.xlane.f32.xlu2 %v774_v18 }
 0x40d   : > { %v777_v19 = vsel %vm679_vm7, %v744_v16, -inf }
 0x40e   : > { %778 = vmax.xlane.f32.xlu1 %v777_v19  ;;  %v1941_v19 = vld [vmem:[%s2650_s7 + $0x8] sm:$0xff] }
 0x410   : > { %v721_v20 = vpop.f32.mrf.mxu3 }
 0x411   : > { %v1940_v20 = vld [vmem:[%s2650_s7] sm:$0xff] }
 0x412   : > { %v745_v21 = vpop.f32.mrf.mxu0  ;;  %v767_v22 = vpop.f32.mrf.mxu1 }
 0x413   : > { %v768_v23 = vadd.f32 %v767_v22, %v2368_v12 }
 0x415   : > { %v780_v24 = vsel %vm679_vm7, %v768_v23, -inf }
 0x416   : > { %781 = vmax.xlane.f32.xlu0 %v780_v24 }
 0x41a   : > { %v769_v27 = vpop.f32.mrf.mxu1 }
 0x41e   : > { %772 = vmax.xlane.f32.xlu0 %v771_v28 }
 0x427   : > { %862 = vrot.lane.b32.xlu1 %v725_v0, %s2671_s29 }
 0x42f   : > { %819 = vrot.lane.b32.xlu1 %v676_v52, %s2671_s29 }
 0x47f   : > { %v776_v29 = vpop.xlane.xlu2 %775 }
 0x480   : > { %v784_v32 = vsub.f32 %v720_v14, %v776_v29  ;;  %v2021_v29 = vld [vmem:[%s2651_s8] ss:$0 sm:$0xff] }
 0x481   : > { %v779_v30 = vpop.xlane.xlu1 %778 }
 0x482   : > { %v785_v31 = vsub.f32 %v744_v16, %v779_v30  ;;  %v789_v34 = vmul.f32 1.442695, %v784_v32 }
 0x484   : > { %v791_v33 = vmul.f32 1.442695, %v785_v31 }
 0x486   : > { %2038 = vpow2.f32 %v791_v33 }
 0x487   : > { %2040 = vpow2.f32 %v789_v34 }
 0x489   : > { %v782_v35 = vpop.xlane.xlu0 %781 }
 0x48a   : > { %v786_v36 = vsub.f32 %v768_v23, %v782_v35 }
 0x48c   : > { %v2039_v37 = vpop.eup %2038  ;;  %v793_v38 = vmul.f32 1.442695, %v786_v36 }
 0x48d   : > { %v801_v39 = vsel %vm679_vm7, %v2039_v37, 0.0  ;;  %v2041_v40 = vpop.eup %2040 }
 0x48e   : > { %2042 = vpow2.f32 %v793_v38  ;;  %802 = vadd.xlane.f32.xlu0 %v801_v39  ;;  %v798_v43 = vsel %vm679_vm7, %v2041_v40, 0.0 }
 0x491   : > { %v773_v48 = vpop.xlane.xlu0 %772 }
 0x492   : > { %v783_v49 = vsub.f32 %v696_v26, %v773_v48 }
 0x494   : > { %v2043_v41 = vpop.eup %2042  ;;  %v787_v50 = vmul.f32 1.442695, %v783_v49 }
 0x495   : > { %v804_v42 = vsel %vm679_vm7, %v2043_v41, 0.0 }
 0x496   : > { %805 = vadd.xlane.f32.xlu2 %v804_v42  ;;  %799 = vadd.xlane.f32.xlu0 %v798_v43  ;;  %2044 = vpow2.f32 %v787_v50  ;;  %v1947_v50 = vld [vmem:[%s2656_s13 + $0x18] sm:$0xff] }
 0x499   : > { %v863_v44 = vpop.permute.xlu1 %862 }
 0x49a   : > { %v868_v45 = vsel %vm824_vm8, %v863_v44, 0  ;;  %v1950_v44 = vld [vmem:[%s2656_s13 + $0x30] sm:$0xff] }
 0x49b   : > { %877 = vmatpush.bf16.msra.mxu0 %v868_v45 }
 0x49c   : > { %v2045_v51 = vpop.eup %2044 }
 0x49d   : > { %v795_v52 = vsel %vm679_vm7, %v2045_v51, 0.0 }
 0x4a1   : > { %v820_v46 = vpop.permute.xlu1 %819 }
 0x4a2   : > { %v826_v47 = vsel %vm824_vm8, %v820_v46, 0  ;;  %v1949_v46 = vld [vmem:[%s2656_s13 + $0x28] sm:$0xff] }
 0x4a3   : > { %835 = vmatpush.bf16.msrb.mxu2 %v826_v47  ;;  %v1948_v47 = vld [vmem:[%s2656_s13 + $0x20] sm:$0xff] }
 0x4a7   : > { %951 = vmatpush.bf16.msra.mxu2 %v1941_v19 }
 0x4aa   : > { %841 = vrot.lane.b32.xlu0 %v2348_v59, %s2671_s29 }
 0x4ab   : > { %952 = vmatpush.bf16.msra.mxu2 %v1940_v20  ;;  %v1953_v20 = vld [vmem:[%s2649_s6 + $0x18] sm:$0xff] }
 0x4ae   : > { %883 = vrot.lane.b32.xlu2 %v2355_v3, %s2671_s29  ;;  %s537_s29 = sand.u32 1, %s2130_s25  }
 0x4af   : > { %s1753_s27 = sshll.u32 %s537_s29, 3  ;;  %s1675_s2 = scalar_lea.sflag [#allocation3], %s537_s29 }
 0x4d4   : > { %796 = vadd.xlane.f32.xlu0 %v795_v52 }
 0x501   : > { %v803_v53 = vpop.xlane.xlu0 %802 }
 0x502   : > { %2046 = vrcp.f32 %v803_v53  ;;  %v1946_v53 = vld [vmem:[%s2656_s13 + $0x10] sm:$0xff] }
 0x508   : > { %v2047_v54 = vpop.eup %2046 }
 0x509   : > { %v813_v55 = vmul.f32 %v2047_v54, %v2039_v37  ;;  %v806_v56 = vpop.xlane.xlu2 %805  ;;  %v800_v58 = vpop.xlane.xlu0 %799 }
 0x50a   : > { %2048 = vrcp.f32 %v806_v56  ;;  %v2022_v56 = vld [vmem:[%s2652_s9] ss:$0 sm:$0xff] }
 0x50b   : > { %v817_v57 = vpack.c.bf16 %v813_v55, %v813_v55  ;;  %2050 = vrcp.f32 %v800_v58 }
 0x50d   : > { %1771 = vmatmul.msk.bf16.vlgmr.msra.gmra.mxu0 %vm679_vm7, %v817_v57 }
 0x510   : > { %v2049_v59 = vpop.eup %2048 }
 0x511   : > { %v884_v60 = vpop.permute.xlu2 %883  ;;  %v814_v61 = vmul.f32 %v2049_v59, %v2043_v41  ;;  %v2051_v0 = vpop.eup %2050  ;;  %v1951_v41 = vld [vmem:[%s2656_s13 + $0x38] sm:$0xff]  ;;  %v2023_v59 = vld [vmem:[%s2653_s10] ss:$0 sm:$0xff] }
 0x512   : > { %v889_v62 = vsel %vm824_vm8, %v884_v60, 0  ;;  %v812_v1 = vmul.f32 %v2051_v0, %v2041_v40  ;;  %v1943_v40 = vld [vmem:[%s2654_s11 + $0x8] sm:$0xff]  ;;  %1098 = vmatpush.bf16.msrb.mxu0 %v1951_v41  ;;  %v1944_v0 = vld [vmem:[%s2656_s13] sm:$0xff] }
 0x513   : > { %898 = vmatpush.bf16.msrb.mxu1 %v889_v62  ;;  %v818_v63 = vpack.c.bf16 %v814_v61, %v814_v61 }
 0x514   : > { %v816_v4 = vpack.c.bf16 %v812_v1, %v812_v1  ;;  %v2024_v1 = vld [vmem:[%s2655_s12] ss:$0 sm:$0xff] }
 0x516   : > { %1772 = vmatmul.msk.bf16.vlgmr.msrb.gmra.mxu1 %vm679_vm7, %v818_v63  ;;  %1099 = vmatpush.bf16.msrb.mxu0 %v1950_v44  ;;  %v1945_v63 = vld [vmem:[%s2656_s13 + $0x8] sm:$0xff] }
 0x517   : > { %1173 = vmatpush.bf16.msra.mxu1 %v1953_v20 }
 0x51a   : > { %1100 = vmatpush.bf16.msrb.mxu0 %v1949_v46 }
 0x51c   : > { %v842_v2 = vpop.permute.xlu0 %841 }
 0x51d   : > { %v847_v3 = vsel %vm824_vm8, %v842_v2, 0 }
 0x51e   : > { %856 = vmatpush.bf16.msra.mxu3 %v847_v3  ;;  %1101 = vmatpush.bf16.msrb.mxu0 %v1948_v47 }
 0x521   : > { %1770 = vmatmul.msk.bf16.vlgmr.msra.gmra.mxu3 %vm679_vm7, %v816_v4 }
 0x522   : > { %1021 = vmatpush.bf16.msrb.mxu3 %v1943_v40  ;;  %1102 = vmatpush.bf16.msrb.mxu0 %v1947_v50 }
 0x526   : > { %1103 = vmatpush.bf16.msrb.mxu0 %v1946_v53 }
 0x52a   : > { %1104 = vmatpush.bf16.msrb.mxu0 %v1945_v63 }
 0x52e   : > { %1105 = vmatpush.bf16.msrb.mxu0 %v1944_v0 }
 0x547   : > { %v797_v5 = vpop.xlane.xlu0 %796 }
 0x548   : > { %2052 = vrcp.f32 %v797_v5 }
 0x54e   : > { %v2053_v6 = vpop.eup %2052 }
 0x54f   : > { %v811_v7 = vmul.f32 %v2053_v6, %v2045_v51 }
 0x551   : > { %v815_v8 = vpack.c.bf16 %v811_v7, %v811_v7  ;;  %v2025_v7 = vld [vmem:[%s2657_s14] ss:$0 sm:$0xff] }
 0x553   : > { %1769 = vmatmul.msk.bf16.vlgmr.msrb.gmra.mxu2 %vm679_vm7, %v815_v8 }
 0x58a   : > { %v879_v9 = vpop.f32.mrf.mxu0 }
 0x58b   : > { %909 = vrot.lane.b32.xlu1 %v879_v9, %s2670_s30  ;;  %s1935_s30 = sshll.u32 %s2262_s28, 3 }
 0x58c   : > { %s1685_s20 = scalar_lea.hbm %s2660_s17, %s1935_s30 }
 0x592   : > { %v881_v10 = vpop.f32.mrf.mxu0 }
 0x593   : > { %v900_v11 = vpop.f32.mrf.mxu1 }
 0x59b   : > { %v902_v13 = vpop.f32.mrf.mxu1 }
 0x5a4   : > { %v858_v14 = vpop.f32.mrf.mxu3 }
 0x5a5   : > { %905 = vrot.lane.b32.xlu2 %v858_v14, %s2669_s26 }
 0x5ac   : > { %v860_v15 = vpop.f32.mrf.mxu3 }
 0x5ad   : > { %913 = vrot.lane.b32.xlu2 %v900_v11, %s2668_s19  ;;  %s1689_s19 = sshll.u32 %s1685_s20, 4  ;;  %s1690_s19 = int_to_ptr.hbm [resolvable:$true] %s1689_s19 }
 0x5ae   : > { %s2090_s28 = sshra.s32 %s1690_s19, 4  ;;  %s2091_s28 = int_to_ptr.hbm [resolvable:$true] %s2090_s28 }
 0x5af   : > { %s2092_s3 = scalar_lea.hbm %s2091_s28, 8  ;;  %p2097_p0 = scmp.lt.s32.totalorder %s2091_s28, %s2660_s17 }
 0x5b0   : > { %p2093_p11 = scmp.ne.s32.totalorder %s2091_s28, %s2092_s3  ;;  %p2098_p1 = scmp.lt.s32.totalorder %s2096_s0, %s2092_s3 }
 0x5b2   : > { %p2094_p12 = pnand %p2093_p11, %p2279_p5  ;;  %p2099_p2 = por %p2098_p1, %p2097_p0 }
 0x5b4   : > { %p2095_p13 = pneg %p2094_p12 }
 0x5b6   : > { %p2100_p3 = pnand %p2099_p2, %p2095_p13 }
 0x5d6   : > { %v837_v16 = vpop.f32.mrf.mxu2 }
 0x5de   : > { %v839_v18 = vpop.f32.mrf.mxu2 }
 0x5fd   : > { %v910_v23 = vpop.permute.xlu1 %909 }
 0x5ff   : > { %v906_v21 = vpop.permute.xlu2 %905 }
 0x600   : > { %v916_v22 = vsel %vm679_vm7, %v837_v16, %v906_v21  ;;  %v1952_v21 = vld [vmem:[%s2649_s6 + $0x10] sm:$0xff] }
 0x601   : > { %v918_v24 = vsel %vm917_vm9, %v916_v22, %v910_v23  ;;  %1174 = vmatpush.bf16.msra.mxu1 %v1952_v21 }
 0x607   : > { %v914_v26 = vpop.permute.xlu2 %913 }
 0x608   : > { %v920_v27 = vsel %vm919_vm10, %v918_v24, %v914_v26 }
 0x609   : > { %v921_v28 = vpack.c.bf16 %v920_v27, %v920_v27 }
 0x60b   : > { %1781 = vmatmul.msk.bf16.vlgmr.msra.gmra.mxu2 %vm589_vm2, %v921_v28 }
 0x68e   : > { %v954_v30 = vpop.f32.mrf.mxu2 }
 0x68f   : > { %v955_v31 = vadd.f32 %v2021_v29, %v954_v30 }
 0x691   : > { %v958_v32 = vadd.f32 %v955_v31, %v2321_v17  ;;  %v1942_v17 = vld [vmem:[%s2654_s11] sm:$0xff] }
 0x692   : > { %1022 = vmatpush.bf16.msrb.mxu3 %v1942_v17 }
 0x693   : > { %v961_v33 = vsel %vm589_vm2, %v958_v32, 0.0 }
 0x694   : > { %962 = vadd.xlane.f32.xlu1 %v961_v33 }
 0x696   : > { %v956_v34 = vpop.f32.mrf.mxu2 }
 0x707   : > { %v963_v35 = vpop.xlane.xlu1 %962 }
 0x708   : > { %v964_v36 = vmul.f32 %v963_v35, %v2325_v25  ;;  %v2027_v35 = vld [vmem:[%s2648_s5 + $0x1] ss:$0 sm:$0xff] }
 0x70a   : > { %v965_v37 = vsub.f32 %v958_v32, %v964_v36 }
 0x70c   : > { %v966_v38 = vmul.f32 %v965_v37, %v965_v37 }
 0x70e   : > { %v967_v39 = vsel %vm589_vm2, %v966_v38, 0.0 }
 0x70f   : > { %968 = vadd.xlane.f32.xlu2 %v967_v39 }
 0x782   : > { %v969_v42 = vpop.xlane.xlu2 %968 }
 0x783   : > { %v970_v43 = vmul.f32 %v969_v42, %v2325_v25 }
 0x785   : > { %v971_v45 = vadd.f32 1e-05, %v970_v43 }
 0x787   : > { %2054 = vrsqrt.f32 %v971_v45  ;;  %vm978_vm12 = vweird.f32 %v971_v45 }
 0x78d   : > { %v2055_v48 = vpop.eup %2054 }
 0x78e   : > { %v973_v49 = vmul.f32 %v2055_v48, %v971_v45  ;;  %vm979_vm11 = vweird.f32 %v2055_v48 }
 0x78f   : > { %vm980_vm13 = vmor %vm978_vm12, %vm979_vm11 }
 0x790   : > { %v974_v51 = vmul.f32 %v2055_v48, %v973_v49 }
 0x792   : > { %v975_v52 = vmul.f32 0.5, %v974_v51 }
 0x794   : > { %v976_v54 = vsub.f32 1.5, %v975_v52 }
 0x796   : > { %v977_v55 = vmul.f32 %v2055_v48, %v976_v54 }
 0x798   : > { %v981_v57 = vsel %vm980_vm13, %v2055_v48, %v977_v55 }
 0x799   : > { %v982_v58 = vmul.f32 %v981_v57, %v965_v37 }
 0x79b   : > { %v986_v60 = vmul.f32 %v2022_v56, %v982_v58 }
 0x79d   : > { %v990_v61 = vadd.f32 %v2023_v59, %v986_v60 }
 0x79f   : > { %v991_v62 = vpack.c.bf16 %v990_v61, %v990_v61 }
 0x7a1   : > { %1790 = vmatmul.msk.bf16.vlgmr.msrb.gmra.mxu3 %vm589_vm2, %v991_v62 }
 0x824   : > { %v1024_v2 = vpop.f32.mrf.mxu3 }
 0x825   : > { %v1025_v3 = vadd.f32 %v2024_v1, %v1024_v2 }
 0x827   : > { %v1028_v4 = vmax.f32 %v1025_v3, 0.0 }
 0x829   : > { %v1029_v5 = vpack.c.bf16 %v1028_v4, %v1028_v4 }
 0x82b   : > { %1106 = vmatmul.bf16.vlgmr.msrb.gmra.mxu0 %v1029_v5 }
 0x82c   : > { %v1026_v6 = vpop.f32.mrf.mxu3 }
 0x8a8   : > { %v1107_v8 = vpop.f32.mrf.mxu0 }
 0x8a9   : > { %v1108_v9 = vadd.f32 %v2025_v7, %v1107_v8 }
 0x8ab   : > { %v2460_v10 = vadd.f32 %v1108_v9, %v958_v32  ;;  %v2026_v32 = vld [vmem:[%s2647_s4 + $0x1] ss:$0 sm:$0xff] }
 0x8ad   : > { %v1116_v11 = vsel %vm589_vm2, %v2460_v10, 0.0 }
 0x8ae   : > { %1117 = vadd.xlane.f32.xlu0 %v1116_v11 }
 0x8b0   : > { %v1109_v13 = vpop.f32.mrf.mxu0 }
 0x921   : > { %v1118_v14 = vpop.xlane.xlu0 %1117 }
 0x922   : > { %v1119_v15 = vmul.f32 %v1118_v14, %v2325_v25 }
 0x924   : > { %v1120_v16 = vsub.f32 %v2460_v10, %v1119_v15 }
 0x926   : > { %v1121_v18 = vmul.f32 %v1120_v16, %v1120_v16 }
 0x928   : > { %v1122_v19 = vsel %vm589_vm2, %v1121_v18, 0.0 }
 0x929   : > { %1123 = vadd.xlane.f32.xlu0 %v1122_v19 }
 0x99c   : > { %v1124_v22 = vpop.xlane.xlu0 %1123 }
 0x99d   : > { %v1125_v23 = vmul.f32 %v1124_v22, %v2325_v25 }
 0x99f   : > { %v1126_v24 = vadd.f32 1e-05, %v1125_v23 }
 0x9a1   : > { %2056 = vrsqrt.f32 %v1126_v24  ;;  %vm1133_vm15 = vweird.f32 %v1126_v24 }
 0x9a7   : > { %v2057_v26 = vpop.eup %2056 }
 0x9a8   : > { %v1128_v27 = vmul.f32 %v2057_v26, %v1126_v24  ;;  %vm1134_vm14 = vweird.f32 %v2057_v26 }
 0x9a9   : > { %vm1135_vm0 = vmor %vm1133_vm15, %vm1134_vm14 }
 0x9aa   : > { %v1129_v28 = vmul.f32 %v2057_v26, %v1128_v27 }
 0x9ac   : > { %v1130_v29 = vmul.f32 0.5, %v1129_v28 }
 0x9ae   : > { %v1131_v30 = vsub.f32 1.5, %v1130_v29 }
 0x9b0   : > { %v1132_v31 = vmul.f32 %v2057_v26, %v1131_v30 }
 0x9b2   : > { %v1136_v33 = vsel %vm1135_vm0, %v2057_v26, %v1132_v31 }
 0x9b3   : > { %v1137_v34 = vmul.f32 %v1136_v33, %v1120_v16 }
 0x9b5   : > { %v1141_v36 = vmul.f32 %v2026_v32, %v1137_v34 }
 0x9b7   : > { %v1145_v37 = vadd.f32 %v2027_v35, %v1141_v36 }
 0x9b9   : > { %v1146_v38 = vpack.c.bf16 %v1145_v37, %v1145_v37 }
 0x9bb   : > { %1837 = vmatmul.msk.bf16.vlgmr.msra.gmra.mxu1 %vm589_vm2, %v1146_v38 }
 0xa38   : > { %v1176_v39 = vpop.f32.mrf.mxu1 }
 0xa39   : > { %v1190_v40 = vpack.c.bf16 %v1176_v39, %v1176_v39  ;;  %1184 = vrot.lane.b32.xlu2 %v1176_v39, %s2143_s18  ;;  %1181 = vrot.lane.b32.xlu1 %v1176_v39, %s2144_s21  ;;  %s2690_s18 = smov 64   ;;  %s2691_s21 = smov 16  }
 0xa3a   : > { %1187 = vrot.lane.b32.xlu0 %v1176_v39, %s2145_s16  ;;  %s2692_s16 = smov 8  }
 0xa3b   : > { %v1195_v17 = vunpack.c.l.b16 %v1190_v40 }
 0xa3d   : > { %v2484_v42 = vpack.c.b16 %v1195_v17, %v1195_v17 }
 0xa40   : > { %v1178_v41 = vpop.f32.mrf.mxu1 }
 0xa42   : > { %1197 = vrot.lane.b32.xlu0 %v2484_v42, %s2146_s24 }
 0xa93   : > { %v1185_v43 = vpop.permute.xlu2 %1184 }
 0xa94   : > { %v1192_v44 = vpack.c.bf16 %v1185_v43, %v1185_v43 }
 0xa96   : > { %v1243_v45 = vunpack.c.l.b16 %v1192_v44 }
 0xa98   : > { %v1244_v46 = vpack.c.b16 %v1243_v45, %v1243_v45 }
 0xa9a   : > { %1245 = vrot.lane.b32.xlu2 %v1244_v46, %s2146_s24 }
 0xaab   : > { %v1182_v47 = vpop.permute.xlu1 %1181 }
 0xaac   : > { %v1191_v48 = vpack.c.bf16 %v1182_v47, %v1182_v47  ;;  %v1188_v49 = vpop.permute.xlu0 %1187 }
 0xaad   : > { %v1193_v50 = vpack.c.bf16 %v1188_v49, %v1188_v49 }
 0xaae   : > { %v1219_v51 = vunpack.c.l.b16 %v1191_v48 }
 0xaaf   : > { %v1267_v52 = vunpack.c.l.b16 %v1193_v50 }
 0xab0   : > { %v2489_v53 = vpack.c.b16 %v1219_v51, %v1219_v51 }
 0xab1   : > { %v2491_v54 = vpack.c.b16 %v1267_v52, %v1267_v52 }
 0xab2   : > { %1221 = vrot.lane.b32.xlu1 %v2489_v53, %s2146_s24 }
 0xab3   : > { %1269 = vrot.lane.b32.xlu0 %v2491_v54, %s2146_s24  ;;  %s2693_s24 = smov 24  }
 0xab4   : > { %v1198_v55 = vpop.permute.xlu0 %1197 }
 0xab5   : > { %v1203_v56 = vsel %vm679_vm7, %v1198_v55, 0 }
 0xab6   : > { %1212 = vmatpush.bf16.xpose.msrb.mxu2 %v1203_v56 }
 0xabd   : > { %1838 = vmatmul.msk.bf16.vlgmr.msrb.gmra.mxu2 %vm679_vm7, %v1190_v40 }
 0xaf4   : > { %v1246_v57 = vpop.permute.xlu2 %1245 }
 0xaf5   : > { %v1251_v58 = vsel %vm679_vm7, %v1246_v57, 0 }
 0xaf6   : > { %1260 = vmatpush.bf16.xpose.msrb.mxu1 %v1251_v58 }
 0xafd   : > { %1840 = vmatmul.msk.bf16.vlgmr.msrb.gmra.mxu1 %vm679_vm7, %v1192_v44 }
 0xb24   : > { %v1222_v59 = vpop.permute.xlu1 %1221 }
 0xb25   : > { %v1227_v60 = vsel %vm679_vm7, %v1222_v59, 0  ;;  %v1270_v61 = vpop.permute.xlu0 %1269 }
 0xb26   : > { %v1275_v62 = vsel %vm679_vm7, %v1270_v61, 0  ;;  %1236 = vmatpush.bf16.xpose.msra.mxu3 %v1227_v60 }
 0xb27   : > { %1284 = vmatpush.bf16.xpose.msra.mxu2 %v1275_v62 }
 0xb2d   : > { %1839 = vmatmul.msk.bf16.vlgmr.msra.gmra.mxu3 %vm679_vm7, %v1191_v48 }
 0xb2e   : > { %1841 = vmatmul.msk.bf16.vlgmr.msra.gmra.mxu2 %vm679_vm7, %v1193_v50 }
 0xb40   : > { %v1214_v63 = vpop.f32.mrf.mxu2 }
 0xb41   : > { %v1215_v13 = vadd.f32 %v1214_v63, %v2368_v12 }
 0xb43   : > { %v1290_v16 = vsel %vm679_vm7, %v1215_v13, -inf }
 0xb48   : > { %v1216_v0 = vpop.f32.mrf.mxu2 }
 0xb7a   : > { %v1262_v1 = vpop.f32.mrf.mxu1 }
 0xb7b   : > { %v1263_v2 = vadd.f32 %v1262_v1, %v2368_v12 }
 0xb7d   : > { %v1296_v3 = vsel %vm679_vm7, %v1263_v2, -inf }
 0xb7e   : > { %1297 = vmax.xlane.f32.xlu2 %v1296_v3 }
 0xb82   : > { %v1264_v4 = vpop.f32.mrf.mxu1 }
 0xbb0   : > { %v1238_v5 = vpop.f32.mrf.mxu3 }
 0xbb1   : > { %v1239_v6 = vadd.f32 %v1238_v5, %v2368_v12  ;;  %v1286_v7 = vpop.f32.mrf.mxu2  ;;  %v1955_v5 = vld [vmem:[%s2650_s7 + $0x18] sm:$0xff] }
 0xbb2   : > { %v1287_v8 = vadd.f32 %v1286_v7, %v2368_v12 }
 0xbb3   : > { %v1293_v9 = vsel %vm679_vm7, %v1239_v6, -inf }
 0xbb4   : > { %1294 = vmax.xlane.f32.xlu1 %v1293_v9  ;;  %v1299_v11 = vsel %vm679_vm7, %v1287_v8, -inf }
 0xbb5   : > { %1300 = vmax.xlane.f32.xlu0 %v1299_v11 }
 0xbb8   : > { %v1240_v14 = vpop.f32.mrf.mxu3 }
 0xbb9   : > { %v1288_v15 = vpop.f32.mrf.mxu2 }
 0xbbd   : > { %1291 = vmax.xlane.f32.xlu0 %v1290_v16  ;;  %v2028_v16 = vld [vmem:[%s2651_s8 + $0x1] ss:$0 sm:$0xff] }
 0xbf1   : > { %v1298_v18 = vpop.xlane.xlu2 %1297 }
 0xbf2   : > { %v1304_v19 = vsub.f32 %v1263_v2, %v1298_v18 }
 0xbf4   : > { %v1310_v20 = vmul.f32 1.442695, %v1304_v19 }
 0xbf6   : > { %2058 = vpow2.f32 %v1310_v20 }
 0xbfc   : > { %v2059_v21 = vpop.eup %2058 }
 0xbfd   : > { %v1320_v22 = vsel %vm679_vm7, %v2059_v21, 0.0 }
 0xbfe   : > { %1321 = vadd.xlane.f32.xlu0 %v1320_v22 }
 0xc12   : > { %1380 = vrot.lane.b32.xlu0 %v1244_v46, %s2690_s18 }
 0xc27   : > { %v1295_v23 = vpop.xlane.xlu1 %1294 }
 0xc28   : > { %v1303_v24 = vsub.f32 %v1239_v6, %v1295_v23  ;;  %v1301_v26 = vpop.xlane.xlu0 %1300  ;;  %v1954_v6 = vld [vmem:[%s2650_s7 + $0x10] sm:$0xff] }
 0xc29   : > { %v1305_v27 = vsub.f32 %v1287_v8, %v1301_v26 }
 0xc2a   : > { %v1308_v12 = vmul.f32 1.442695, %v1303_v24 }
 0xc2b   : > { %v1312_v28 = vmul.f32 1.442695, %v1305_v27 }
 0xc2c   : > { %2060 = vpow2.f32 %v1308_v12 }
 0xc2d   : > { %2062 = vpow2.f32 %v1312_v28  ;;  %v1957_v28 = vld [vmem:[%s2654_s11 + $0x18] sm:$0xff] }
 0xc30   : > { %v1292_v29 = vpop.xlane.xlu0 %1291 }
 0xc31   : > { %v1302_v30 = vsub.f32 %v1215_v13, %v1292_v29  ;;  %v1965_v29 = vld [vmem:[%s2656_s13 + $0x78] sm:$0xff] }
 0xc32   : > { %v2061_v31 = vpop.eup %2060 }
 0xc33   : > { %v2063_v32 = vpop.eup %2062  ;;  %v1306_v33 = vmul.f32 1.442695, %v1302_v30  ;;  %v1317_v34 = vsel %vm679_vm7, %v2061_v31, 0.0 }
 0xc34   : > { %v1323_v35 = vsel %vm679_vm7, %v2063_v32, 0.0  ;;  %1318 = vadd.xlane.f32.xlu2 %v1317_v34  ;;  %v1963_v34 = vld [vmem:[%s2656_s13 + $0x68] sm:$0xff] }
 0xc35   : > { %2064 = vpow2.f32 %v1306_v33  ;;  %1324 = vadd.xlane.f32.xlu1 %v1323_v35  ;;  %v1962_v35 = vld [vmem:[%s2656_s13 + $0x60] sm:$0xff] }
 0xc3b   : > { %v2065_v36 = vpop.eup %2064 }
 0xc3c   : > { %v1314_v37 = vsel %vm679_vm7, %v2065_v36, 0.0 }
 0xc3d   : > { %1315 = vadd.xlane.f32.xlu0 %v1314_v37 }
 0xc4c   : > { %1359 = vrot.lane.b32.xlu2 %v2489_v53, %s2690_s18 }
 0xc4e   : > { %1401 = vrot.lane.b32.xlu1 %v2491_v54, %s2690_s18 }
 0xc56   : > { %1338 = vrot.lane.b32.xlu1 %v2484_v42, %s2690_s18 }
 0xc71   : > { %v1322_v38 = vpop.xlane.xlu0 %1321 }
 0xc72   : > { %2066 = vrcp.f32 %v1322_v38 }
 0xc78   : > { %v2067_v39 = vpop.eup %2066 }
 0xc79   : > { %v1332_v40 = vmul.f32 %v2067_v39, %v2059_v21 }
 0xc7b   : > { %v1336_v43 = vpack.c.bf16 %v1332_v40, %v1332_v40  ;;  %v1960_v40 = vld [vmem:[%s2656_s13 + $0x50] sm:$0xff] }
 0xc84   : > { %v1381_v17 = vpop.permute.xlu0 %1380 }
 0xc85   : > { %v1386_v41 = vsel %vm824_vm8, %v1381_v17, 0 }
 0xc86   : > { %1395 = vmatpush.bf16.msra.mxu1 %v1386_v41 }
 0xc89   : > { %1844 = vmatmul.msk.bf16.vlgmr.msra.gmra.mxu1 %vm679_vm7, %v1336_v43  ;;  %v2029_v43 = vld [vmem:[%s2652_s9 + $0x1] ss:$0 sm:$0xff] }
 0xc8a   : > { %1622 = vmatpush.bf16.msrb.mxu1 %v1965_v29 }
 0xca7   : > { %v1319_v44 = vpop.xlane.xlu2 %1318 }
 0xca8   : > { %2068 = vrcp.f32 %v1319_v44  ;;  %v1325_v42 = vpop.xlane.xlu1 %1324 }
 0xca9   : > { %2070 = vrcp.f32 %v1325_v42  ;;  %v1959_v42 = vld [vmem:[%s2656_s13 + $0x48] sm:$0xff] }
 0xcae   : > { %v2069_v45 = vpop.eup %2068 }
 0xcaf   : > { %v1331_v46 = vmul.f32 %v2069_v45, %v2061_v31  ;;  %v1360_v47 = vpop.permute.xlu2 %1359  ;;  %v2071_v51 = vpop.eup %2070 }
 0xcb0   : > { %v1365_v48 = vsel %vm824_vm8, %v1360_v47, 0  ;;  %v1316_v50 = vpop.xlane.xlu0 %1315  ;;  %v1333_v52 = vmul.f32 %v2071_v51, %v2063_v32  ;;  %v1964_v32 = vld [vmem:[%s2656_s13 + $0x70] sm:$0xff]  ;;  %v2031_v51 = vld [vmem:[%s2655_s12 + $0x1] ss:$0 sm:$0xff] }
 0xcb1   : > { %v1335_v49 = vpack.c.bf16 %v1331_v46, %v1331_v46  ;;  %1374 = vmatpush.bf16.msra.mxu0 %v1365_v48  ;;  %2072 = vrcp.f32 %v1316_v50  ;;  %1623 = vmatpush.bf16.msrb.mxu1 %v1964_v32  ;;  %v2030_v46 = vld [vmem:[%s2653_s10 + $0x1] ss:$0 sm:$0xff] }
 0xcb2   : > { %v1337_v55 = vpack.c.bf16 %v1333_v52, %v1333_v52  ;;  %v1958_v50 = vld [vmem:[%s2656_s13 + $0x40] sm:$0xff] }
 0xcb4   : > { %1843 = vmatmul.msk.bf16.vlgmr.msra.gmra.mxu0 %vm679_vm7, %v1335_v49 }
 0xcb5   : > { %1543 = vmatpush.bf16.msrb.mxu0 %v1957_v28  ;;  %1624 = vmatpush.bf16.msrb.mxu1 %v1963_v34 }
 0xcb7   : > { %v2073_v56 = vpop.eup %2072 }
 0xcb8   : > { %v1330_v57 = vmul.f32 %v2073_v56, %v2065_v36 }
 0xcb9   : > { %1625 = vmatpush.bf16.msrb.mxu1 %v1962_v35 }
 0xcba   : > { %v1334_v60 = vpack.c.bf16 %v1330_v57, %v1330_v57  ;;  %v1967_v57 = vld [vmem:[%s2658_s15 + $0x8] sm:$0xff] }
 0xcc0   : > { %v1402_v53 = vpop.permute.xlu1 %1401 }
 0xcc1   : > { %v1407_v54 = vsel %vm824_vm8, %v1402_v53, 0 }
 0xcc2   : > { %1416 = vmatpush.bf16.msrb.mxu2 %v1407_v54 }
 0xcc5   : > { %1845 = vmatmul.msk.bf16.vlgmr.msrb.gmra.mxu2 %vm679_vm7, %v1337_v55 }
 0xcc6   : > { %1666 = vmatpush.bf16.msra.mxu2 %v1967_v57 }
 0xcc8   : > { %v1339_v58 = vpop.permute.xlu1 %1338 }
 0xcc9   : > { %v1344_v59 = vsel %vm824_vm8, %v1339_v58, 0  ;;  %v1966_v58 = vld [vmem:[%s2658_s15] sm:$0xff] }
 0xcca   : > { %1353 = vmatpush.bf16.msrb.mxu3 %v1344_v59  ;;  %1667 = vmatpush.bf16.msra.mxu2 %v1966_v58  ;;  %v2032_v59 = vld [vmem:[%s2657_s14 + $0x1] ss:$0 sm:$0xff] }
 0xccd   : > { %1842 = vmatmul.msk.bf16.vlgmr.msrb.gmra.mxu3 %vm679_vm7, %v1334_v60 }
 0xcce   : > { %1469 = vmatpush.bf16.msra.mxu3 %v1955_v5 }
 0xcd2   : > { %1470 = vmatpush.bf16.msra.mxu3 %v1954_v6 }
 0xd06   : > { %v1397_v61 = vpop.f32.mrf.mxu1 }
 0xd07   : > { %1427 = vrot.lane.b32.xlu1 %v1397_v61, %s2691_s21 }
 0xd0e   : > { %v1399_v62 = vpop.f32.mrf.mxu1 }
 0xd31   : > { %v1376_v63 = vpop.f32.mrf.mxu0 }
 0xd32   : > { %1423 = vrot.lane.b32.xlu2 %v1376_v63, %s2692_s16  ;;  %s2694_s16 = sld [smem:[#allocation15_spill]] }
 0xd39   : > { %v1378_v0 = vpop.f32.mrf.mxu0 }
 0xd48   : > { %v1418_v1 = vpop.f32.mrf.mxu2 }
 0xd49   : > { %1431 = vrot.lane.b32.xlu2 %v1418_v1, %s2693_s24  ;;  %v2033_v1 = vld [vmem:[%s2694_s16] ss:$0 sm:$0xff]  ;;  %s539_s24 = scalar_lea.vmem [#allocation2], %s1753_s27 }
 0xd4a   : > { %s1687_s26 = sshll.u32 %s539_s24, 4  ;;  %s1688_s26 = int_to_ptr.vmem [resolvable:$true] %s1687_s26 }
 0xd50   : > { %v1355_v2 = vpop.f32.mrf.mxu3  ;;  %v1420_v3 = vpop.f32.mrf.mxu2 }
 0xd58   : > { %v1357_v4 = vpop.f32.mrf.mxu3 }
 0xd79   : > { %v1428_v9 = vpop.permute.xlu1 %1427 }
 0xd8c   : > { %v1424_v7 = vpop.permute.xlu2 %1423 }
 0xd8d   : > { %v1434_v8 = vsel %vm679_vm7, %v1355_v2, %v1424_v7 }
 0xd8e   : > { %v1435_v11 = vsel %vm917_vm9, %v1434_v8, %v1428_v9 }
 0xda3   : > { %v1432_v13 = vpop.permute.xlu2 %1431 }
 0xda4   : > { %v1436_v14 = vsel %vm919_vm10, %v1435_v11, %v1432_v13 }
 0xda5   : > { %v1437_v15 = vpack.c.bf16 %v1436_v14, %v1436_v14 }
 0xda7   : > { %1859 = vmatmul.msk.bf16.vlgmr.msra.gmra.mxu3 %vm589_vm2, %v1437_v15 }
 0xe2a   : > { %v1472_v18 = vpop.f32.mrf.mxu3 }
 0xe2b   : > { %v1473_v19 = vadd.f32 %v2028_v16, %v1472_v18 }
 0xe2d   : > { %v2549_v20 = vadd.f32 %v1473_v19, %v2460_v10  ;;  %v1956_v10 = vld [vmem:[%s2654_s11 + $0x10] sm:$0xff] }
 0xe2e   : > { %1544 = vmatpush.bf16.msrb.mxu0 %v1956_v10 }
 0xe2f   : > { %v1481_v21 = vsel %vm589_vm2, %v2549_v20, 0.0 }
 0xe30   : > { %1482 = vadd.xlane.f32.xlu1 %v1481_v21 }
 0xe32   : > { %v1474_v22 = vpop.f32.mrf.mxu3 }
 0xea3   : > { %v1483_v23 = vpop.xlane.xlu1 %1482 }
 0xea4   : > { %v1484_v24 = vmul.f32 %v1483_v23, %v2325_v25 }
 0xea6   : > { %v1485_v26 = vsub.f32 %v2549_v20, %v1484_v24 }
 0xea8   : > { %v1486_v27 = vmul.f32 %v1485_v26, %v1485_v26 }
 0xeaa   : > { %v1487_v12 = vsel %vm589_vm2, %v1486_v27, 0.0 }
 0xeab   : > { %1488 = vadd.xlane.f32.xlu2 %v1487_v12 }
 0xf1e   : > { %v1489_v30 = vpop.xlane.xlu2 %1488 }
 0xf1f   : > { %v1490_v31 = vmul.f32 %v1489_v30, %v2325_v25  ;;  %v1961_v25 = vld [vmem:[%s2656_s13 + $0x58] sm:$0xff] }
 0xf20   : > { %1626 = vmatpush.bf16.msrb.mxu1 %v1961_v25 }
 0xf21   : > { %v1491_v33 = vadd.f32 1e-05, %v1490_v31 }
 0xf23   : > { %2074 = vrsqrt.f32 %v1491_v33  ;;  %vm1498_vm3 = vweird.f32 %v1491_v33 }
 0xf24   : > { %1627 = vmatpush.bf16.msrb.mxu1 %v1960_v40 }
 0xf28   : > { %1628 = vmatpush.bf16.msrb.mxu1 %v1959_v42 }
 0xf29   : > { %v2075_v36 = vpop.eup %2074 }
 0xf2a   : > { %v1493_v37 = vmul.f32 %v2075_v36, %v1491_v33  ;;  %vm1499_vm1 = vweird.f32 %v2075_v36 }
 0xf2b   : > { %vm1500_vm4 = vmor %vm1498_vm3, %vm1499_vm1 }
 0xf2c   : > { %v1494_v38 = vmul.f32 %v2075_v36, %v1493_v37  ;;  %1629 = vmatpush.bf16.msrb.mxu1 %v1958_v50 }
 0xf2e   : > { %v1495_v39 = vmul.f32 0.5, %v1494_v38 }
 0xf30   : > { %v1496_v17 = vsub.f32 1.5, %v1495_v39 }
 0xf32   : > { %v1497_v41 = vmul.f32 %v2075_v36, %v1496_v17 }
 0xf34   : > { %v1501_v44 = vsel %vm1500_vm4, %v2075_v36, %v1497_v41 }
 0xf35   : > { %v1502_v45 = vmul.f32 %v1501_v44, %v1485_v26 }
 0xf37   : > { %v1506_v47 = vmul.f32 %v2029_v43, %v1502_v45 }
 0xf39   : > { %v1510_v48 = vadd.f32 %v2030_v46, %v1506_v47 }
 0xf3b   : > { %v1511_v49 = vpack.c.bf16 %v1510_v48, %v1510_v48 }
 0xf3d   : > { %1875 = vmatmul.msk.bf16.vlgmr.msrb.gmra.mxu0 %vm589_vm2, %v1511_v49 }
 0xfba   : > { %v1546_v52 = vpop.f32.mrf.mxu0 }
 0xfbb   : > { %v1547_v53 = vadd.f32 %v2031_v51, %v1546_v52 }
 0xfbd   : > { %v1550_v54 = vmax.f32 %v1547_v53, 0.0 }
 0xfbf   : > { %v1551_v55 = vpack.c.bf16 %v1550_v54, %v1550_v54 }
 0xfc1   : > { %1630 = vmatmul.bf16.vlgmr.msrb.gmra.mxu1 %v1551_v55 }
 0xfc2   : > { %v1548_v56 = vpop.f32.mrf.mxu0 }
0x103e   : > { %v1631_v60 = vpop.f32.mrf.mxu1 }
0x103f   : > { %v1632_v61 = vadd.f32 %v2032_v59, %v1631_v60 }
0x1041   : > { %v1635_v62 = vadd.f32 %v1632_v61, %v2549_v20 }
0x1043   : > { %v1636_v63 = vpack.c.bf16 %v1635_v62, %v1635_v62 }
0x1045   : > { %1933 = vmatmul.msk.bf16.vlgmr.msra.gmra.mxu2 %vm589_vm2, %v1636_v63 }
0x1046   : > { %v1633_v0 = vpop.f32.mrf.mxu1 }
0x10c8   : > { %v1669_v2 = vpop.f32.mrf.mxu2 }
0x10c9   : > { %v1670_v3 = vadd.f32 %v2033_v1, %v1669_v2 }
0x10cb   : > { %1673 = vst [vmem:[%s539_s24] sm:$0xff] %v1670_v3 }
0x10cc   : > { %2103 = shalt.err (!%p2100_p3)
}
0x10cd   : > { %1968 = dma.vmem_to_hbm [thread:$0]  (%p2279_p5), %s1688_s26, 128, %s1690_s19, %s1675_s2  }
0x10d0   : > { %v1671_v4 = vpop.f32.mrf.mxu2 }
0x10d1 PF: > { %s2695_s29 = sld [smem:[#allocation7_spill]] }
0x10d2   : > { %s2696_s20 = sld [smem:[#allocation5_spill]] }
0x10d7   : > { %p1974_p4 = scmp.ge.s32.totalorder %s2695_s29, 2 }
0x10d8   : > { %s1701_s16 = sand.u32 1, %s2696_s20  }
0x10d9   : > { %p1971_p7 = pnand %p1974_p4, %p2283_p6  ;;  %s1702_s24 = scalar_lea.sflag [#allocation3], %s1701_s16 }
0x10db   : > { %p1972_p8 = pneg %p1971_p7 }
0x10dd   : > { %2121 = dma.done.wait (%p1972_p8), %s1702_s24, 128  }
0x10de   : > { %2123 = vsyncadd (%p1972_p8), %s1702_s24, 4294967168  ;;  %s2698_s27 = sld [smem:[#allocation8_spill]]  ;;  %s2701_s24 = smov %s2130_s25 }
0x10df   : > { %s2699_s3 = sld [smem:[#allocation6_spill]] }
0x10e0   : > { %s2700_s26 = sld [smem:[#allocation9_spill]] }
0x10e4   : > { %p27_p9 = scmp.ge.s32.totalorder %s2698_s27, 4  }
0x10e5   : > { %s2702_s25 = smov %s2699_s3 }
0x10e6   :  { %29 = sbr.rel (!%p27_p9) target bundleno = 9 (0x9), region = 134 }
0x10eb   :  { %1708 = vsyncpa [#allocation3], 1 }
0x10ec   :  { %1710 = vsyncpa [#allocation3 + $0x1], 1 }

</bundles_post_ra>
